<compile_context>
chip_gen: v7x
topology: tpu7x:2x2x1
jax: 0.10.0
libtpu: 0.0.40
codegen_flags: <defaults>
</compile_context>

<pallas_src>
import math
import functools

import jax
import jax.numpy as jnp
from jax.experimental import pallas as pl
from jax.experimental.pallas import tpu as pltpu


# ----------------------------------------------------------------------------
# Shared math helper (used both in-kernel and in the pure-JAX reference)
# ----------------------------------------------------------------------------

def _layernorm(x, gamma, beta, eps=1e-5):
    mean = jnp.mean(x, axis=-1, keepdims=True)
    xc = x - mean
    var = jnp.mean(xc * xc, axis=-1, keepdims=True)
    return xc * jax.lax.rsqrt(var + eps) * gamma + beta


# ----------------------------------------------------------------------------
# Pallas kernel: one (batch-tile, layer) grid step of the encoder stack
# ----------------------------------------------------------------------------

def encoder_layer_kernel(x_ref, mask_ref,
                         wqkv_ref, bqkv_ref, wo_ref, bo_ref,
                         g1_ref, be1_ref, w1_ref, b1_ref, w2_ref, b2_ref,
                         g2_ref, be2_ref,
                         o_ref, act_ref, *, num_heads):
    layer = pl.program_id(1)
    num_layers = pl.num_programs(1)
    Bt, S, D = act_ref.shape
    H = num_heads
    dh = D // H
    scale = 1.0 / math.sqrt(dh)
    TOK = o_ref.shape[1]

    # First layer of this batch tile: load the input block into the resident
    # activation scratch; it stays in VMEM for the whole layer sweep.
    @pl.when(layer == 0)
    def _():
        act_ref[...] = x_ref[...]

    h2 = act_ref[...].reshape(Bt * S, D)                       # (Bt*S, D) f32

    # ---- self-attention -----------------------------------------------------
    # fused QKV projection: bf16 operands, f32 accumulation on the MXU
    qkv = (jnp.dot(h2.astype(jnp.bfloat16), wqkv_ref[0],
                   preferred_element_type=jnp.float32) + bqkv_ref[0])
    qkv = qkv.reshape(Bt, S, 3 * D)
    q = qkv[:, :, 0:D] * scale          # fold 1/sqrt(dh) into q once per layer
    k = qkv[:, :, D:2 * D]
    v = qkv[:, :, 2 * D:3 * D]

    # hoist the additive key-padding mask broadcast out of the head loop
    mask_b = jnp.broadcast_to(mask_ref[...], (Bt, S, S))       # (Bt, S, S) f32

    # per-head scores / softmax / context (3-D batched einsums); head contexts
    # are concatenated along lanes so the output projection is a single
    # full-D-contraction matmul on the MXU.
    ctx_heads = []
    for hd in range(H):                  # H is small and static
        lo = hd * dh
        qh = q[:, :, lo:lo + dh].astype(jnp.bfloat16)
        kh = k[:, :, lo:lo + dh].astype(jnp.bfloat16)
        vh = v[:, :, lo:lo + dh].astype(jnp.bfloat16)
        s = jnp.einsum('bqd,bkd->bqk', qh, kh,
                       preferred_element_type=jnp.float32) + mask_b
        s = s - jnp.max(s, axis=-1, keepdims=True)
        p = jnp.exp(s)
        p = p * pl.reciprocal(jnp.sum(p, axis=-1, keepdims=True), approx=True)
        ctx_heads.append(
            jnp.einsum('bqk,bkd->bqd', p.astype(jnp.bfloat16), vh,
                       preferred_element_type=jnp.float32))
    ctx = jnp.concatenate(ctx_heads, axis=-1).reshape(Bt * S, D)

    attn = (jnp.dot(ctx.astype(jnp.bfloat16), wo_ref[0],
                    preferred_element_type=jnp.float32) + bo_ref[0])

    # residual + LayerNorm 1 (post-norm, nn.TransformerEncoderLayer default)
    y = _layernorm(h2 + attn, g1_ref[0], be1_ref[0])

    # ---- feed-forward: linear1 -> relu -> linear2 ---------------------------
    ff = (jnp.dot(y.astype(jnp.bfloat16), w1_ref[0],
                  preferred_element_type=jnp.float32) + b1_ref[0])
    ff = jnp.maximum(ff, 0.0)
    ff = (jnp.dot(ff.astype(jnp.bfloat16), w2_ref[0],
                  preferred_element_type=jnp.float32) + b2_ref[0])

    # residual + LayerNorm 2; carry activation in the resident scratch
    h_new = _layernorm(y + ff, g2_ref[0], be2_ref[0])
    act_ref[...] = h_new.reshape(Bt, S, D)

    # Only the first TOK tokens (mu = token 0, logvar = token 1; sublane
    # aligned) are written back to HBM — the full activation never leaves VMEM.
    @pl.when(layer == num_layers - 1)
    def _():
        o_ref[...] = h_new.reshape(Bt, S, D)[:, :TOK, :].astype(o_ref.dtype)


# ----------------------------------------------------------------------------
# pallas_call wrapper
# ----------------------------------------------------------------------------

def _pick_batch_tile(B, S, max_rows=512):
    """Largest batch tile that keeps <= max_rows rows per step while leaving at
    least two parallel grid steps for the v7x megacore (when B > 1)."""
    bt = 1
    for cand in range(1, B + 1):
        if B % cand == 0 and cand * S <= max_rows and B // cand >= min(2, B):
            bt = cand
    return bt


def _vmem_limit_bytes(Bt, S, D, FF, H, TOK):
    bf16, f32 = 2, 4
    weights = 2 * bf16 * (3 * D * D + D * D + 2 * D * FF)      # dbl-buffered per-layer matmul weights
    smalls = 2 * f32 * (3 * D + 6 * D + FF)                    # biases + LN params
    blocks = 2 * f32 * (Bt * S * D + Bt * S + Bt * TOK * D)    # x / mask / out double buffers
    scratch = f32 * Bt * S * D                                 # resident activation
    live = f32 * (Bt * S * (8 * D + FF) + 2 * H * Bt * S * S)  # matmul temporaries
    est = weights + smalls + blocks + scratch + live
    return int(min(max(2 * est, 32 << 20), 64 << 20))          # 2x margin, <= v7x 64 MiB


def encoder_stack(h0, mask_add, params, num_heads, num_layers, out_tokens=8):
    """h0: (B, S, D) f32; mask_add: (B, 1, S) f32 additive key-padding mask.
    Returns (B, out_tokens, D): only the leading tokens are stored to HBM."""
    B, S, D = h0.shape
    L = num_layers
    FF = params['w1'].shape[-1]
    assert S % 8 == 0 and out_tokens <= S and D % num_heads == 0

    Bt = _pick_batch_tile(B, S)
    nb = B // Bt

    def bspec(shape):   # blocks indexed by the (parallel) batch-tile axis
        return pl.BlockSpec(shape, lambda b, l: (b, 0, 0))

    def lspec(shape):   # per-layer weight blocks streamed along the layer axis
        return pl.BlockSpec(shape, lambda b, l: (l, 0, 0))

    kernel = functools.partial(encoder_layer_kernel, num_heads=num_heads)

    return pl.pallas_call(
        kernel,
        out_shape=jax.ShapeDtypeStruct((B, out_tokens, D), jnp.float32),
        grid=(nb, L),
        in_specs=[
            bspec((Bt, S, D)),                            # x
            bspec((Bt, 1, S)),                            # additive mask
            lspec((1, D, 3 * D)), lspec((1, 1, 3 * D)),   # Wqkv, bqkv
            lspec((1, D, D)), lspec((1, 1, D)),           # Wo, bo
            lspec((1, 1, D)), lspec((1, 1, D)),           # ln1 gamma, beta
            lspec((1, D, FF)), lspec((1, 1, FF)),         # W1, b1
            lspec((1, FF, D)), lspec((1, 1, D)),          # W2, b2
            lspec((1, 1, D)), lspec((1, 1, D)),           # ln2 gamma, beta
        ],
        out_specs=bspec((Bt, out_tokens, D)),
        scratch_shapes=[pltpu.VMEM((Bt, S, D), jnp.float32)],
        compiler_params=pltpu.CompilerParams(
            dimension_semantics=("parallel", "arbitrary"),
            vmem_limit_bytes=_vmem_limit_bytes(Bt, S, D, FF, num_heads,
                                               out_tokens)),
    )(h0, mask_add,
      params['wqkv'], params['bqkv'], params['wo'], params['bo'],
      params['g1'], params['be1'], params['w1'], params['b1'],
      params['w2'], params['b2'], params['g2'], params['be2'])


# ----------------------------------------------------------------------------
# Glue (plain JAX): input projection, query concat, positional encoding, mask
# ----------------------------------------------------------------------------

def positional_encoding(max_len, D):
    position = jnp.arange(max_len, dtype=jnp.float32)[:, None]
    div_term = jnp.exp(jnp.arange(0, D, 2, dtype=jnp.float32)
                       * (-math.log(10000.0) / D))
    pe = jnp.zeros((max_len, D), dtype=jnp.float32)
    pe = pe.at[:, 0::2].set(jnp.sin(position * div_term))
    pe = pe.at[:, 1::2].set(jnp.cos(position * div_term))
    return pe  # (max_len, D)


def _embed_inputs(x, lengths, params):
    bs, njoints, nfeats, nframes = x.shape
    input_dim = njoints * nfeats
    D = params['in_w'].shape[1]

    # InputProcess: (bs, nj, nf, T) -> (T, bs, nj*nf) -> Linear (tiny, left to XLA)
    xf = jnp.transpose(x, (3, 0, 1, 2)).reshape(nframes, bs, input_dim)
    emb = xf @ params['in_w'] + params['in_b']                 # (T, bs, D)

    # prepend mu / sigma query tokens
    muq = jnp.broadcast_to(params['mu_query'], (1, bs, D))
    sigq = jnp.broadcast_to(params['sigma_query'], (1, bs, D))
    xseq = jnp.concatenate([muq, sigq, emb], axis=0)           # (S_raw, bs, D)
    S_raw = nframes + 2

    # positional encoding (dropout == identity at inference)
    xseq = xseq + params['pe'][:S_raw][:, None, :]

    # pad sequence to a multiple of 8 for sublane alignment (padded keys masked)
    S = ((S_raw + 7) // 8) * 8
    xseq = jnp.pad(xseq, ((0, S - S_raw), (0, 0), (0, 0)))

    # additive key-padding mask for lengths + 2 (queries + frames) + padding
    positions = jnp.arange(S)[None, :]
    kpm = positions >= (lengths + 2)[:, None]                  # True == masked
    mask_add = jnp.where(kpm, -1e9, 0.0).astype(jnp.float32)[:, None, :]

    h0 = jnp.transpose(xseq, (1, 0, 2)).astype(jnp.float32)    # (bs, S, D)
    return h0, mask_add


@functools.partial(jax.jit, static_argnums=(3, 4))
def transformer_encoder_forward(x, lengths, params, num_heads, num_layers):
    h0, mask_add = _embed_inputs(x, lengths, params)
    out = encoder_stack(h0, mask_add, params, num_heads, num_layers)
    mu = out[:, 0, :]
    logvar = out[:, 1, :]
    return mu, logvar


# ----------------------------------------------------------------------------
# Pure-JAX (f32) reference for a tolerance check
# ----------------------------------------------------------------------------

def _encoder_stack_reference(h0, mask_add, params, num_heads, num_layers):
    B, S, D = h0.shape
    H = num_heads
    dh = D // H
    scale = 1.0 / math.sqrt(dh)
    h = h0
    for l in range(num_layers):
        wqkv = params['wqkv'][l].astype(jnp.float32)
        wo = params['wo'][l].astype(jnp.float32)
        w1 = params['w1'][l].astype(jnp.float32)
        w2 = params['w2'][l].astype(jnp.float32)
        qkv = (h.reshape(B * S, D) @ wqkv + params['bqkv'][l]).reshape(B, S, 3 * D)
        q = (qkv[:, :, 0:D] * scale).reshape(B, S, H, dh)
        k = qkv[:, :, D:2 * D].reshape(B, S, H, dh)
        v = qkv[:, :, 2 * D:3 * D].reshape(B, S, H, dh)
        s = jnp.einsum('bqhd,bkhd->bhqk', q, k) + mask_add[:, :, None, :]
        p = jax.nn.softmax(s, axis=-1)
        ctx = jnp.einsum('bhqk,bkhd->bqhd', p, v).reshape(B * S, D)
        attn = ctx @ wo + params['bo'][l]
        y = _layernorm(h.reshape(B * S, D) + attn, params['g1'][l], params['be1'][l])
        ff = jnp.maximum(y @ w1 + params['b1'][l], 0.0)
        ff = ff @ w2 + params['b2'][l]
        h = _layernorm(y + ff, params['g2'][l], params['be2'][l]).reshape(B, S, D)
    return h


def transformer_encoder_reference(x, lengths, params, num_heads, num_layers):
    h0, mask_add = _embed_inputs(x, lengths, params)
    h = _encoder_stack_reference(h0, mask_add, params, num_heads, num_layers)
    return h[:, 0, :], h[:, 1, :]


# ----------------------------------------------------------------------------
# Deterministic parameter init (shapes follow the PyTorch module; stacked layers)
# ----------------------------------------------------------------------------

def init_params(key, input_dim, D, FF, num_layers, max_len=64):
    ks = jax.random.split(key, 16)

    def nrm(k, shape, scale=0.05):
        return jax.random.normal(k, shape, dtype=jnp.float32) * scale

    L = num_layers
    return {
        'in_w': nrm(ks[0], (input_dim, D)),
        'in_b': nrm(ks[1], (1, D)),
        'mu_query': jax.random.normal(ks[2], (D,), dtype=jnp.float32),
        'sigma_query': jax.random.normal(ks[3], (D,), dtype=jnp.float32),
        'pe': positional_encoding(max_len, D),
        # per-layer weights stacked along a leading layer axis; matmul weights bf16
        'wqkv': nrm(ks[4], (L, D, 3 * D)).astype(jnp.bfloat16),   # [Q | K | V] cols
        'bqkv': nrm(ks[5], (L, 1, 3 * D)),
        'wo':   nrm(ks[6], (L, D, D)).astype(jnp.bfloat16),
        'bo':   nrm(ks[7], (L, 1, D)),
        'g1':   jnp.ones((L, 1, D), jnp.float32),
        'be1':  jnp.zeros((L, 1, D), jnp.float32),
        'w1':   nrm(ks[8], (L, D, FF)).astype(jnp.bfloat16),
        'b1':   nrm(ks[9], (L, 1, FF)),
        'w2':   nrm(ks[10], (L, FF, D)).astype(jnp.bfloat16),
        'b2':   nrm(ks[11], (L, 1, D)),
        'g2':   jnp.ones((L, 1, D), jnp.float32),
        'be2':  jnp.zeros((L, 1, D), jnp.float32),
    }


# TODO(synk): training-mode dropout (identity at inference) and the `device`
#             distributed setup from the PyTorch module are not modeled.

if __name__ == "__main__":
    # small demo shapes; latent_dim kept at a multiple of 128 for lane-dense layout
    bs, njoints, nfeats, nframes = 2, 6, 4, 12
    latent_dim, ff_size, num_heads, num_layers = 128, 256, 4, 2

    key = jax.random.PRNGKey(0)
    kx, kp = jax.random.split(key)
    x = jax.random.normal(kx, (bs, njoints, nfeats, nframes), dtype=jnp.float32)
    # max(lengths) == nframes so the mask spans queries + all frames
    lengths = jnp.array([nframes, 9], dtype=jnp.int32)

    params = init_params(kp, njoints * nfeats, latent_dim, ff_size, num_layers)

    mu, logvar = transformer_encoder_forward(x, lengths, params,
                                             num_heads, num_layers)
    jax.block_until_ready((mu, logvar))
    assert mu.shape == (bs, latent_dim) and logvar.shape == (bs, latent_dim)
    assert bool(jnp.all(jnp.isfinite(mu))) and bool(jnp.all(jnp.isfinite(logvar)))

    # tolerance check vs. a pure-JAX f32 reference (kernel uses bf16 MXU
    # operands + approx-reciprocal softmax, hence the loose tolerance)
    mu_ref, logvar_ref = transformer_encoder_reference(x, lengths, params,
                                                       num_heads, num_layers)
    assert bool(jnp.allclose(mu, mu_ref, atol=0.1, rtol=0.1)), \
        float(jnp.max(jnp.abs(mu - mu_ref)))
    assert bool(jnp.allclose(logvar, logvar_ref, atol=0.1, rtol=0.1)), \
        float(jnp.max(jnp.abs(logvar - logvar_ref)))

    print("KERNEL_OK")
</pallas_src>

<mosaic_0001>
module attributes {stable_mosaic.version = 11 : i64} {
  func.func @encoder_layer_kernel(%arg0: i32, %arg1: i32, %arg2: memref<1x16x128xf32, #tpu.memory_space<vmem>>, %arg3: memref<1x1x16xf32, #tpu.memory_space<vmem>>, %arg4: memref<1x128x384xbf16, #tpu.memory_space<vmem>>, %arg5: memref<1x1x384xf32, #tpu.memory_space<vmem>>, %arg6: memref<1x128x128xbf16, #tpu.memory_space<vmem>>, %arg7: memref<1x1x128xf32, #tpu.memory_space<vmem>>, %arg8: memref<1x1x128xf32, #tpu.memory_space<vmem>>, %arg9: memref<1x1x128xf32, #tpu.memory_space<vmem>>, %arg10: memref<1x128x256xbf16, #tpu.memory_space<vmem>>, %arg11: memref<1x1x256xf32, #tpu.memory_space<vmem>>, %arg12: memref<1x256x128xbf16, #tpu.memory_space<vmem>>, %arg13: memref<1x1x128xf32, #tpu.memory_space<vmem>>, %arg14: memref<1x1x128xf32, #tpu.memory_space<vmem>>, %arg15: memref<1x1x128xf32, #tpu.memory_space<vmem>>, %arg16: memref<1x8x128xf32, #tpu.memory_space<vmem>>, %arg17: memref<1x16x128xf32, #tpu.memory_space<vmem>>) attributes {dimension_semantics = [#tpu.dimension_semantics<parallel>, #tpu.dimension_semantics<arbitrary>], iteration_bounds = array<i64: 2, 2>, scalar_prefetch = 0 : i64, scratch_operands = 1 : i64, tpu.core_type = #tpu.core_type<tc>, window_params = [{transform_indices = @transform_0, window_bounds = array<i64: 1, 16, 128>}, {transform_indices = @transform_1, window_bounds = array<i64: 1, 1, 16>}, {transform_indices = @transform_2, window_bounds = array<i64: 1, 128, 384>}, {transform_indices = @transform_3, window_bounds = array<i64: 1, 1, 384>}, {transform_indices = @transform_4, window_bounds = array<i64: 1, 128, 128>}, {transform_indices = @transform_5, window_bounds = array<i64: 1, 1, 128>}, {transform_indices = @transform_6, window_bounds = array<i64: 1, 1, 128>}, {transform_indices = @transform_7, window_bounds = array<i64: 1, 1, 128>}, {transform_indices = @transform_8, window_bounds = array<i64: 1, 128, 256>}, {transform_indices = @transform_9, window_bounds = array<i64: 1, 1, 256>}, {transform_indices = @transform_10, window_bounds = array<i64: 1, 256, 128>}, {transform_indices = @transform_11, window_bounds = array<i64: 1, 1, 128>}, {transform_indices = @transform_12, window_bounds = array<i64: 1, 1, 128>}, {transform_indices = @transform_13, window_bounds = array<i64: 1, 1, 128>}, {transform_indices = @transform_14, window_bounds = array<i64: 1, 8, 128>}]} {
    %c0_i32 = arith.constant 0 : i32
    %0 = arith.cmpi eq, %arg1, %c0_i32 : i32
    %1 = arith.extui %0 : i1 to i32
    %c0_i32_0 = arith.constant 0 : i32
    %2 = arith.cmpi ne, %1, %c0_i32_0 : i32
    scf.if %2 {
      %c0_77 = arith.constant 0 : index
      %c0_78 = arith.constant 0 : index
      %c0_79 = arith.constant 0 : index
      %185 = vector.load %arg2[%c0_77, %c0_78, %c0_79] : memref<1x16x128xf32, #tpu.memory_space<vmem>>, vector<1x16x128xf32>
      %c0_80 = arith.constant 0 : index
      %c0_81 = arith.constant 0 : index
      %c0_82 = arith.constant 0 : index
      %186 = vector.load %arg17[%c0_80, %c0_81, %c0_82] : memref<1x16x128xf32, #tpu.memory_space<vmem>>, vector<1x16x128xf32>
      tpu.vector_store %arg17[%c0_80, %c0_81, %c0_82], %185 {strides = array<i32>} : memref<1x16x128xf32, #tpu.memory_space<vmem>>, vector<1x16x128xf32>,
    } else {
    }
    %c0 = arith.constant 0 : index
    %c0_1 = arith.constant 0 : index
    %c0_2 = arith.constant 0 : index
    %3 = vector.load %arg17[%c0, %c0_1, %c0_2] : memref<1x16x128xf32, #tpu.memory_space<vmem>>, vector<1x16x128xf32>
    %4 = vector.shape_cast %3 : vector<1x16x128xf32> to vector<16x128xf32>
    %5 = arith.truncf %4 : vector<16x128xf32> to vector<16x128xbf16>
    %c0_3 = arith.constant 0 : index
    %c0_4 = arith.constant 0 : index
    %c0_5 = arith.constant 0 : index
    %6 = vector.load %arg4[%c0_3, %c0_4, %c0_5] : memref<1x128x384xbf16, #tpu.memory_space<vmem>>, vector<1x128x384xbf16>
    %7 = vector.shape_cast %6 : vector<1x128x384xbf16> to vector<128x384xbf16>
    %cst = arith.constant dense<0.000000e+00> : vector<16x384xf32>
    %8 = tpu.matmul %5, %7, %cst {dimension_numbers = #tpu.dot_dimension_numbers<[1], [0], [0], [1], [0, 0, 1, 1], [], []>} : vector<16x128xbf16>, vector<128x384xbf16>, vector<16x384xf32> -> vector<16x384xf32>
    %c0_6 = arith.constant 0 : index
    %c0_7 = arith.constant 0 : index
    %c0_8 = arith.constant 0 : index
    %9 = vector.load %arg5[%c0_6, %c0_7, %c0_8] : memref<1x1x384xf32, #tpu.memory_space<vmem>>, vector<1x1x384xf32>
    %10 = vector.shape_cast %9 : vector<1x1x384xf32> to vector<1x384xf32>
    %11 = vector.broadcast %10 : vector<1x384xf32> to vector<16x384xf32>
    %12 = arith.addf %8, %11 : vector<16x384xf32>
    %13 = vector.shape_cast %12 : vector<16x384xf32> to vector<1x16x384xf32>
    %14 = vector.extract_strided_slice %13 {offsets = [0, 0, 0], sizes = [1, 16, 128], strides = [1, 1, 1]} : vector<1x16x384xf32> to vector<1x16x128xf32>
    %cst_9 = arith.constant 0.176776692 : f32
    %15 = vector.broadcast %cst_9 : f32 to vector<1x16x128xf32>
    %16 = arith.mulf %14, %15 : vector<1x16x128xf32>
    %17 = vector.extract_strided_slice %13 {offsets = [0, 0, 128], sizes = [1, 16, 128], strides = [1, 1, 1]} : vector<1x16x384xf32> to vector<1x16x128xf32>
    %18 = vector.extract_strided_slice %13 {offsets = [0, 0, 256], sizes = [1, 16, 128], strides = [1, 1, 1]} : vector<1x16x384xf32> to vector<1x16x128xf32>
    %c0_10 = arith.constant 0 : index
    %c0_11 = arith.constant 0 : index
    %c0_12 = arith.constant 0 : index
    %19 = vector.load %arg3[%c0_10, %c0_11, %c0_12] : memref<1x1x16xf32, #tpu.memory_space<vmem>>, vector<1x1x16xf32>
    %20 = vector.shape_cast %19 : vector<1x1x16xf32> to vector<1x1x16xf32>
    %21 = vector.broadcast %20 : vector<1x1x16xf32> to vector<1x16x16xf32>
    %22 = vector.extract_strided_slice %16 {offsets = [0, 0, 0], sizes = [1, 16, 32], strides = [1, 1, 1]} : vector<1x16x128xf32> to vector<1x16x32xf32>
    %23 = arith.truncf %22 : vector<1x16x32xf32> to vector<1x16x32xbf16>
    %24 = vector.extract_strided_slice %17 {offsets = [0, 0, 0], sizes = [1, 16, 32], strides = [1, 1, 1]} : vector<1x16x128xf32> to vector<1x16x32xf32>
    %25 = arith.truncf %24 : vector<1x16x32xf32> to vector<1x16x32xbf16>
    %26 = vector.extract_strided_slice %18 {offsets = [0, 0, 0], sizes = [1, 16, 32], strides = [1, 1, 1]} : vector<1x16x128xf32> to vector<1x16x32xf32>
    %27 = arith.truncf %26 : vector<1x16x32xf32> to vector<1x16x32xbf16>
    "tpu.trace_start"() <{level = 10 : i32, message = "bqd,bkd->bqk"}> : () -> ()
    %cst_13 = arith.constant dense<0.000000e+00> : vector<1x16x16xf32>
    %28 = tpu.matmul %23, %25, %cst_13 {dimension_numbers = #tpu.dot_dimension_numbers<[2], [2], [1], [1], [0, 0, 0, 1, 1, 1], [0], [0]>} : vector<1x16x32xbf16>, vector<1x16x32xbf16>, vector<1x16x16xf32> -> vector<1x16x16xf32>
    "tpu.trace_stop"() : () -> ()
    %29 = arith.addf %28, %21 : vector<1x16x16xf32>
    %cst_14 = arith.constant dense<0xFF800000> : vector<1x16xf32>
    %30 = vector.multi_reduction <maximumf>, %29, %cst_14 [2] : vector<1x16x16xf32> to vector<1x16xf32>
    %31 = vector.shape_cast %30 : vector<1x16xf32> to vector<1x16x1xf32>
    %32 = vector.broadcast %31 : vector<1x16x1xf32> to vector<1x16x16xf32>
    %33 = arith.subf %29, %32 : vector<1x16x16xf32>
    %34 = math.exp %33 : vector<1x16x16xf32>
    %cst_15 = arith.constant dense<0.000000e+00> : vector<1x16xf32>
    %35 = vector.multi_reduction <add>, %34, %cst_15 [2] : vector<1x16x16xf32> to vector<1x16xf32>
    %36 = vector.shape_cast %35 : vector<1x16xf32> to vector<1x16x1xf32>
    %37 = tpu.reciprocal %36 {approx = true} : vector<1x16x1xf32> -> vector<1x16x1xf32>
    %38 = vector.broadcast %37 : vector<1x16x1xf32> to vector<1x16x16xf32>
    %39 = arith.mulf %34, %38 : vector<1x16x16xf32>
    %40 = arith.truncf %39 : vector<1x16x16xf32> to vector<1x16x16xbf16>
    "tpu.trace_start"() <{level = 10 : i32, message = "bqk,bkd->bqd"}> : () -> ()
    %cst_16 = arith.constant dense<0.000000e+00> : vector<1x16x32xf32>
    %41 = tpu.matmul %40, %27, %cst_16 {dimension_numbers = #tpu.dot_dimension_numbers<[2], [1], [1], [2], [0, 0, 0, 1, 1, 2], [0], [0]>} : vector<1x16x16xbf16>, vector<1x16x32xbf16>, vector<1x16x32xf32> -> vector<1x16x32xf32>
    "tpu.trace_stop"() : () -> ()
    %42 = vector.extract_strided_slice %16 {offsets = [0, 0, 32], sizes = [1, 16, 32], strides = [1, 1, 1]} : vector<1x16x128xf32> to vector<1x16x32xf32>
    %43 = arith.truncf %42 : vector<1x16x32xf32> to vector<1x16x32xbf16>
    %44 = vector.extract_strided_slice %17 {offsets = [0, 0, 32], sizes = [1, 16, 32], strides = [1, 1, 1]} : vector<1x16x128xf32> to vector<1x16x32xf32>
    %45 = arith.truncf %44 : vector<1x16x32xf32> to vector<1x16x32xbf16>
    %46 = vector.extract_strided_slice %18 {offsets = [0, 0, 32], sizes = [1, 16, 32], strides = [1, 1, 1]} : vector<1x16x128xf32> to vector<1x16x32xf32>
    %47 = arith.truncf %46 : vector<1x16x32xf32> to vector<1x16x32xbf16>
    "tpu.trace_start"() <{level = 10 : i32, message = "bqd,bkd->bqk"}> : () -> ()
    %cst_17 = arith.constant dense<0.000000e+00> : vector<1x16x16xf32>
    %48 = tpu.matmul %43, %45, %cst_17 {dimension_numbers = #tpu.dot_dimension_numbers<[2], [2], [1], [1], [0, 0, 0, 1, 1, 1], [0], [0]>} : vector<1x16x32xbf16>, vector<1x16x32xbf16>, vector<1x16x16xf32> -> vector<1x16x16xf32>
    "tpu.trace_stop"() : () -> ()
    %49 = arith.addf %48, %21 : vector<1x16x16xf32>
    %cst_18 = arith.constant dense<0xFF800000> : vector<1x16xf32>
    %50 = vector.multi_reduction <maximumf>, %49, %cst_18 [2] : vector<1x16x16xf32> to vector<1x16xf32>
    %51 = vector.shape_cast %50 : vector<1x16xf32> to vector<1x16x1xf32>
    %52 = vector.broadcast %51 : vector<1x16x1xf32> to vector<1x16x16xf32>
    %53 = arith.subf %49, %52 : vector<1x16x16xf32>
    %54 = math.exp %53 : vector<1x16x16xf32>
    %cst_19 = arith.constant dense<0.000000e+00> : vector<1x16xf32>
    %55 = vector.multi_reduction <add>, %54, %cst_19 [2] : vector<1x16x16xf32> to vector<1x16xf32>
    %56 = vector.shape_cast %55 : vector<1x16xf32> to vector<1x16x1xf32>
    %57 = tpu.reciprocal %56 {approx = true} : vector<1x16x1xf32> -> vector<1x16x1xf32>
    %58 = vector.broadcast %57 : vector<1x16x1xf32> to vector<1x16x16xf32>
    %59 = arith.mulf %54, %58 : vector<1x16x16xf32>
    %60 = arith.truncf %59 : vector<1x16x16xf32> to vector<1x16x16xbf16>
    "tpu.trace_start"() <{level = 10 : i32, message = "bqk,bkd->bqd"}> : () -> ()
    %cst_20 = arith.constant dense<0.000000e+00> : vector<1x16x32xf32>
    %61 = tpu.matmul %60, %47, %cst_20 {dimension_numbers = #tpu.dot_dimension_numbers<[2], [1], [1], [2], [0, 0, 0, 1, 1, 2], [0], [0]>} : vector<1x16x16xbf16>, vector<1x16x32xbf16>, vector<1x16x32xf32> -> vector<1x16x32xf32>
    "tpu.trace_stop"() : () -> ()
    %62 = vector.extract_strided_slice %16 {offsets = [0, 0, 64], sizes = [1, 16, 32], strides = [1, 1, 1]} : vector<1x16x128xf32> to vector<1x16x32xf32>
    %63 = arith.truncf %62 : vector<1x16x32xf32> to vector<1x16x32xbf16>
    %64 = vector.extract_strided_slice %17 {offsets = [0, 0, 64], sizes = [1, 16, 32], strides = [1, 1, 1]} : vector<1x16x128xf32> to vector<1x16x32xf32>
    %65 = arith.truncf %64 : vector<1x16x32xf32> to vector<1x16x32xbf16>
    %66 = vector.extract_strided_slice %18 {offsets = [0, 0, 64], sizes = [1, 16, 32], strides = [1, 1, 1]} : vector<1x16x128xf32> to vector<1x16x32xf32>
    %67 = arith.truncf %66 : vector<1x16x32xf32> to vector<1x16x32xbf16>
    "tpu.trace_start"() <{level = 10 : i32, message = "bqd,bkd->bqk"}> : () -> ()
    %cst_21 = arith.constant dense<0.000000e+00> : vector<1x16x16xf32>
    %68 = tpu.matmul %63, %65, %cst_21 {dimension_numbers = #tpu.dot_dimension_numbers<[2], [2], [1], [1], [0, 0, 0, 1, 1, 1], [0], [0]>} : vector<1x16x32xbf16>, vector<1x16x32xbf16>, vector<1x16x16xf32> -> vector<1x16x16xf32>
    "tpu.trace_stop"() : () -> ()
    %69 = arith.addf %68, %21 : vector<1x16x16xf32>
    %cst_22 = arith.constant dense<0xFF800000> : vector<1x16xf32>
    %70 = vector.multi_reduction <maximumf>, %69, %cst_22 [2] : vector<1x16x16xf32> to vector<1x16xf32>
    %71 = vector.shape_cast %70 : vector<1x16xf32> to vector<1x16x1xf32>
    %72 = vector.broadcast %71 : vector<1x16x1xf32> to vector<1x16x16xf32>
    %73 = arith.subf %69, %72 : vector<1x16x16xf32>
    %74 = math.exp %73 : vector<1x16x16xf32>
    %cst_23 = arith.constant dense<0.000000e+00> : vector<1x16xf32>
    %75 = vector.multi_reduction <add>, %74, %cst_23 [2] : vector<1x16x16xf32> to vector<1x16xf32>
    %76 = vector.shape_cast %75 : vector<1x16xf32> to vector<1x16x1xf32>
    %77 = tpu.reciprocal %76 {approx = true} : vector<1x16x1xf32> -> vector<1x16x1xf32>
    %78 = vector.broadcast %77 : vector<1x16x1xf32> to vector<1x16x16xf32>
    %79 = arith.mulf %74, %78 : vector<1x16x16xf32>
    %80 = arith.truncf %79 : vector<1x16x16xf32> to vector<1x16x16xbf16>
    "tpu.trace_start"() <{level = 10 : i32, message = "bqk,bkd->bqd"}> : () -> ()
    %cst_24 = arith.constant dense<0.000000e+00> : vector<1x16x32xf32>
    %81 = tpu.matmul %80, %67, %cst_24 {dimension_numbers = #tpu.dot_dimension_numbers<[2], [1], [1], [2], [0, 0, 0, 1, 1, 2], [0], [0]>} : vector<1x16x16xbf16>, vector<1x16x32xbf16>, vector<1x16x32xf32> -> vector<1x16x32xf32>
    "tpu.trace_stop"() : () -> ()
    %82 = vector.extract_strided_slice %16 {offsets = [0, 0, 96], sizes = [1, 16, 32], strides = [1, 1, 1]} : vector<1x16x128xf32> to vector<1x16x32xf32>
    %83 = arith.truncf %82 : vector<1x16x32xf32> to vector<1x16x32xbf16>
    %84 = vector.extract_strided_slice %17 {offsets = [0, 0, 96], sizes = [1, 16, 32], strides = [1, 1, 1]} : vector<1x16x128xf32> to vector<1x16x32xf32>
    %85 = arith.truncf %84 : vector<1x16x32xf32> to vector<1x16x32xbf16>
    %86 = vector.extract_strided_slice %18 {offsets = [0, 0, 96], sizes = [1, 16, 32], strides = [1, 1, 1]} : vector<1x16x128xf32> to vector<1x16x32xf32>
    %87 = arith.truncf %86 : vector<1x16x32xf32> to vector<1x16x32xbf16>
    "tpu.trace_start"() <{level = 10 : i32, message = "bqd,bkd->bqk"}> : () -> ()
    %cst_25 = arith.constant dense<0.000000e+00> : vector<1x16x16xf32>
    %88 = tpu.matmul %83, %85, %cst_25 {dimension_numbers = #tpu.dot_dimension_numbers<[2], [2], [1], [1], [0, 0, 0, 1, 1, 1], [0], [0]>} : vector<1x16x32xbf16>, vector<1x16x32xbf16>, vector<1x16x16xf32> -> vector<1x16x16xf32>
    "tpu.trace_stop"() : () -> ()
    %89 = arith.addf %88, %21 : vector<1x16x16xf32>
    %cst_26 = arith.constant dense<0xFF800000> : vector<1x16xf32>
    %90 = vector.multi_reduction <maximumf>, %89, %cst_26 [2] : vector<1x16x16xf32> to vector<1x16xf32>
    %91 = vector.shape_cast %90 : vector<1x16xf32> to vector<1x16x1xf32>
    %92 = vector.broadcast %91 : vector<1x16x1xf32> to vector<1x16x16xf32>
    %93 = arith.subf %89, %92 : vector<1x16x16xf32>
    %94 = math.exp %93 : vector<1x16x16xf32>
    %cst_27 = arith.constant dense<0.000000e+00> : vector<1x16xf32>
    %95 = vector.multi_reduction <add>, %94, %cst_27 [2] : vector<1x16x16xf32> to vector<1x16xf32>
    %96 = vector.shape_cast %95 : vector<1x16xf32> to vector<1x16x1xf32>
    %97 = tpu.reciprocal %96 {approx = true} : vector<1x16x1xf32> -> vector<1x16x1xf32>
    %98 = vector.broadcast %97 : vector<1x16x1xf32> to vector<1x16x16xf32>
    %99 = arith.mulf %94, %98 : vector<1x16x16xf32>
    %100 = arith.truncf %99 : vector<1x16x16xf32> to vector<1x16x16xbf16>
    "tpu.trace_start"() <{level = 10 : i32, message = "bqk,bkd->bqd"}> : () -> ()
    %cst_28 = arith.constant dense<0.000000e+00> : vector<1x16x32xf32>
    %101 = tpu.matmul %100, %87, %cst_28 {dimension_numbers = #tpu.dot_dimension_numbers<[2], [1], [1], [2], [0, 0, 0, 1, 1, 2], [0], [0]>} : vector<1x16x16xbf16>, vector<1x16x32xbf16>, vector<1x16x32xf32> -> vector<1x16x32xf32>
    "tpu.trace_stop"() : () -> ()
    %102 = tpu.concatenate %41, %61, %81, %101 in 2 : vector<1x16x32xf32>, vector<1x16x32xf32>, vector<1x16x32xf32>, vector<1x16x32xf32> -> vector<1x16x128xf32>
    %103 = vector.shape_cast %102 : vector<1x16x128xf32> to vector<16x128xf32>
    %104 = arith.truncf %103 : vector<16x128xf32> to vector<16x128xbf16>
    %c0_29 = arith.constant 0 : index
    %c0_30 = arith.constant 0 : index
    %c0_31 = arith.constant 0 : index
    %105 = vector.load %arg6[%c0_29, %c0_30, %c0_31] : memref<1x128x128xbf16, #tpu.memory_space<vmem>>, vector<1x128x128xbf16>
    %106 = vector.shape_cast %105 : vector<1x128x128xbf16> to vector<128x128xbf16>
    %cst_32 = arith.constant dense<0.000000e+00> : vector<16x128xf32>
    %107 = tpu.matmul %104, %106, %cst_32 {dimension_numbers = #tpu.dot_dimension_numbers<[1], [0], [0], [1], [0, 0, 1, 1], [], []>} : vector<16x128xbf16>, vector<128x128xbf16>, vector<16x128xf32> -> vector<16x128xf32>
    %c0_33 = arith.constant 0 : index
    %c0_34 = arith.constant 0 : index
    %c0_35 = arith.constant 0 : index
    %108 = vector.load %arg7[%c0_33, %c0_34, %c0_35] : memref<1x1x128xf32, #tpu.memory_space<vmem>>, vector<1x1x128xf32>
    %109 = vector.shape_cast %108 : vector<1x1x128xf32> to vector<1x128xf32>
    %110 = vector.broadcast %109 : vector<1x128xf32> to vector<16x128xf32>
    %111 = arith.addf %107, %110 : vector<16x128xf32>
    %112 = arith.addf %4, %111 : vector<16x128xf32>
    %c0_36 = arith.constant 0 : index
    %c0_37 = arith.constant 0 : index
    %c0_38 = arith.constant 0 : index
    %113 = vector.load %arg8[%c0_36, %c0_37, %c0_38] : memref<1x1x128xf32, #tpu.memory_space<vmem>>, vector<1x1x128xf32>
    %114 = vector.shape_cast %113 : vector<1x1x128xf32> to vector<1x128xf32>
    %c0_39 = arith.constant 0 : index
    %c0_40 = arith.constant 0 : index
    %c0_41 = arith.constant 0 : index
    %115 = vector.load %arg9[%c0_39, %c0_40, %c0_41] : memref<1x1x128xf32, #tpu.memory_space<vmem>>, vector<1x1x128xf32>
    %116 = vector.shape_cast %115 : vector<1x1x128xf32> to vector<1x128xf32>
    %cst_42 = arith.constant dense<0.000000e+00> : vector<16xf32>
    %117 = vector.multi_reduction <add>, %112, %cst_42 [1] : vector<16x128xf32> to vector<16xf32>
    %118 = vector.shape_cast %117 : vector<16xf32> to vector<16x1xf32>
    %cst_43 = arith.constant 1.280000e+02 : f32
    %119 = vector.broadcast %cst_43 : f32 to vector<16x1xf32>
    %120 = arith.divf %118, %119 : vector<16x1xf32>
    %121 = vector.broadcast %120 : vector<16x1xf32> to vector<16x128xf32>
    %122 = arith.subf %112, %121 : vector<16x128xf32>
    %123 = arith.mulf %122, %122 : vector<16x128xf32>
    %cst_44 = arith.constant dense<0.000000e+00> : vector<16xf32>
    %124 = vector.multi_reduction <add>, %123, %cst_44 [1] : vector<16x128xf32> to vector<16xf32>
    %125 = vector.shape_cast %124 : vector<16xf32> to vector<16x1xf32>
    %cst_45 = arith.constant 1.280000e+02 : f32
    %126 = vector.broadcast %cst_45 : f32 to vector<16x1xf32>
    %127 = arith.divf %125, %126 : vector<16x1xf32>
    %cst_46 = arith.constant 9.99999974E-6 : f32
    %128 = vector.broadcast %cst_46 : f32 to vector<16x1xf32>
    %129 = arith.addf %127, %128 : vector<16x1xf32>
    %130 = math.rsqrt %129 : vector<16x1xf32>
    %131 = vector.broadcast %130 : vector<16x1xf32> to vector<16x128xf32>
    %132 = arith.mulf %122, %131 : vector<16x128xf32>
    %133 = vector.broadcast %114 : vector<1x128xf32> to vector<16x128xf32>
    %134 = arith.mulf %132, %133 : vector<16x128xf32>
    %135 = vector.broadcast %116 : vector<1x128xf32> to vector<16x128xf32>
    %136 = arith.addf %134, %135 : vector<16x128xf32>
    %137 = arith.truncf %136 : vector<16x128xf32> to vector<16x128xbf16>
    %c0_47 = arith.constant 0 : index
    %c0_48 = arith.constant 0 : index
    %c0_49 = arith.constant 0 : index
    %138 = vector.load %arg10[%c0_47, %c0_48, %c0_49] : memref<1x128x256xbf16, #tpu.memory_space<vmem>>, vector<1x128x256xbf16>
    %139 = vector.shape_cast %138 : vector<1x128x256xbf16> to vector<128x256xbf16>
    %cst_50 = arith.constant dense<0.000000e+00> : vector<16x256xf32>
    %140 = tpu.matmul %137, %139, %cst_50 {dimension_numbers = #tpu.dot_dimension_numbers<[1], [0], [0], [1], [0, 0, 1, 1], [], []>} : vector<16x128xbf16>, vector<128x256xbf16>, vector<16x256xf32> -> vector<16x256xf32>
    %c0_51 = arith.constant 0 : index
    %c0_52 = arith.constant 0 : index
    %c0_53 = arith.constant 0 : index
    %141 = vector.load %arg11[%c0_51, %c0_52, %c0_53] : memref<1x1x256xf32, #tpu.memory_space<vmem>>, vector<1x1x256xf32>
    %142 = vector.shape_cast %141 : vector<1x1x256xf32> to vector<1x256xf32>
    %143 = vector.broadcast %142 : vector<1x256xf32> to vector<16x256xf32>
    %144 = arith.addf %140, %143 : vector<16x256xf32>
    %cst_54 = arith.constant 0.000000e+00 : f32
    %145 = vector.broadcast %cst_54 : f32 to vector<16x256xf32>
    %146 = arith.maximumf %144, %145 : vector<16x256xf32>
    %147 = arith.truncf %146 : vector<16x256xf32> to vector<16x256xbf16>
    %c0_55 = arith.constant 0 : index
    %c0_56 = arith.constant 0 : index
    %c0_57 = arith.constant 0 : index
    %148 = vector.load %arg12[%c0_55, %c0_56, %c0_57] : memref<1x256x128xbf16, #tpu.memory_space<vmem>>, vector<1x256x128xbf16>
    %149 = vector.shape_cast %148 : vector<1x256x128xbf16> to vector<256x128xbf16>
    %cst_58 = arith.constant dense<0.000000e+00> : vector<16x128xf32>
    %150 = tpu.matmul %147, %149, %cst_58 {dimension_numbers = #tpu.dot_dimension_numbers<[1], [0], [0], [1], [0, 0, 1, 1], [], []>} : vector<16x256xbf16>, vector<256x128xbf16>, vector<16x128xf32> -> vector<16x128xf32>
    %c0_59 = arith.constant 0 : index
    %c0_60 = arith.constant 0 : index
    %c0_61 = arith.constant 0 : index
    %151 = vector.load %arg13[%c0_59, %c0_60, %c0_61] : memref<1x1x128xf32, #tpu.memory_space<vmem>>, vector<1x1x128xf32>
    %152 = vector.shape_cast %151 : vector<1x1x128xf32> to vector<1x128xf32>
    %153 = vector.broadcast %152 : vector<1x128xf32> to vector<16x128xf32>
    %154 = arith.addf %150, %153 : vector<16x128xf32>
    %155 = arith.addf %136, %154 : vector<16x128xf32>
    %c0_62 = arith.constant 0 : index
    %c0_63 = arith.constant 0 : index
    %c0_64 = arith.constant 0 : index
    %156 = vector.load %arg14[%c0_62, %c0_63, %c0_64] : memref<1x1x128xf32, #tpu.memory_space<vmem>>, vector<1x1x128xf32>
    %157 = vector.shape_cast %156 : vector<1x1x128xf32> to vector<1x128xf32>
    %c0_65 = arith.constant 0 : index
    %c0_66 = arith.constant 0 : index
    %c0_67 = arith.constant 0 : index
    %158 = vector.load %arg15[%c0_65, %c0_66, %c0_67] : memref<1x1x128xf32, #tpu.memory_space<vmem>>, vector<1x1x128xf32>
    %159 = vector.shape_cast %158 : vector<1x1x128xf32> to vector<1x128xf32>
    %cst_68 = arith.constant dense<0.000000e+00> : vector<16xf32>
    %160 = vector.multi_reduction <add>, %155, %cst_68 [1] : vector<16x128xf32> to vector<16xf32>
    %161 = vector.shape_cast %160 : vector<16xf32> to vector<16x1xf32>
    %cst_69 = arith.constant 1.280000e+02 : f32
    %162 = vector.broadcast %cst_69 : f32 to vector<16x1xf32>
    %163 = arith.divf %161, %162 : vector<16x1xf32>
    %164 = vector.broadcast %163 : vector<16x1xf32> to vector<16x128xf32>
    %165 = arith.subf %155, %164 : vector<16x128xf32>
    %166 = arith.mulf %165, %165 : vector<16x128xf32>
    %cst_70 = arith.constant dense<0.000000e+00> : vector<16xf32>
    %167 = vector.multi_reduction <add>, %166, %cst_70 [1] : vector<16x128xf32> to vector<16xf32>
    %168 = vector.shape_cast %167 : vector<16xf32> to vector<16x1xf32>
    %cst_71 = arith.constant 1.280000e+02 : f32
    %169 = vector.broadcast %cst_71 : f32 to vector<16x1xf32>
    %170 = arith.divf %168, %169 : vector<16x1xf32>
    %cst_72 = arith.constant 9.99999974E-6 : f32
    %171 = vector.broadcast %cst_72 : f32 to vector<16x1xf32>
    %172 = arith.addf %170, %171 : vector<16x1xf32>
    %173 = math.rsqrt %172 : vector<16x1xf32>
    %174 = vector.broadcast %173 : vector<16x1xf32> to vector<16x128xf32>
    %175 = arith.mulf %165, %174 : vector<16x128xf32>
    %176 = vector.broadcast %157 : vector<1x128xf32> to vector<16x128xf32>
    %177 = arith.mulf %175, %176 : vector<16x128xf32>
    %178 = vector.broadcast %159 : vector<1x128xf32> to vector<16x128xf32>
    %179 = arith.addf %177, %178 : vector<16x128xf32>
    %180 = vector.shape_cast %179 : vector<16x128xf32> to vector<1x16x128xf32>
    %c0_73 = arith.constant 0 : index
    %c0_74 = arith.constant 0 : index
    %c0_75 = arith.constant 0 : index
    %181 = vector.load %arg17[%c0_73, %c0_74, %c0_75] : memref<1x16x128xf32, #tpu.memory_space<vmem>>, vector<1x16x128xf32>
    tpu.vector_store %arg17[%c0_73, %c0_74, %c0_75], %180 {strides = array<i32>} : memref<1x16x128xf32, #tpu.memory_space<vmem>>, vector<1x16x128xf32>,
    %c1_i32 = arith.constant 1 : i32
    %182 = arith.cmpi eq, %arg1, %c1_i32 : i32
    %183 = arith.extui %182 : i1 to i32
    %c0_i32_76 = arith.constant 0 : i32
    %184 = arith.cmpi ne, %183, %c0_i32_76 : i32
    scf.if %184 {
      %185 = vector.shape_cast %179 : vector<16x128xf32> to vector<1x16x128xf32>
      %186 = vector.extract_strided_slice %185 {offsets = [0, 0, 0], sizes = [1, 8, 128], strides = [1, 1, 1]} : vector<1x16x128xf32> to vector<1x8x128xf32>
      %c0_77 = arith.constant 0 : index
      %c0_78 = arith.constant 0 : index
      %c0_79 = arith.constant 0 : index
      %187 = vector.load %arg16[%c0_77, %c0_78, %c0_79] : memref<1x8x128xf32, #tpu.memory_space<vmem>>, vector<1x8x128xf32>
      tpu.vector_store %arg16[%c0_77, %c0_78, %c0_79], %186 {strides = array<i32>} : memref<1x8x128xf32, #tpu.memory_space<vmem>>, vector<1x8x128xf32>,
    } else {
    }
    return
  }
  func.func @transform_0(%arg0: i32, %arg1: i32) -> (i32, i32, i32) {
    %c0_i32 = arith.constant 0 : i32
    %c0_i32_0 = arith.constant 0 : i32
    %c0_i32_1 = arith.constant 0 : i32
    return %arg0, %c0_i32, %c0_i32_0 : i32, i32, i32
  }
  func.func @transform_1(%arg0: i32, %arg1: i32) -> (i32, i32, i32) {
    %c0_i32 = arith.constant 0 : i32
    %c0_i32_0 = arith.constant 0 : i32
    %c0_i32_1 = arith.constant 0 : i32
    return %arg0, %c0_i32, %c0_i32_0 : i32, i32, i32
  }
  func.func @transform_2(%arg0: i32, %arg1: i32) -> (i32, i32, i32) {
    %c0_i32 = arith.constant 0 : i32
    %c0_i32_0 = arith.constant 0 : i32
    %c0_i32_1 = arith.constant 0 : i32
    return %arg1, %c0_i32, %c0_i32_0 : i32, i32, i32
  }
  func.func @transform_3(%arg0: i32, %arg1: i32) -> (i32, i32, i32) {
    %c0_i32 = arith.constant 0 : i32
    %c0_i32_0 = arith.constant 0 : i32
    %c0_i32_1 = arith.constant 0 : i32
    return %arg1, %c0_i32, %c0_i32_0 : i32, i32, i32
  }
  func.func @transform_4(%arg0: i32, %arg1: i32) -> (i32, i32, i32) {
    %c0_i32 = arith.constant 0 : i32
    %c0_i32_0 = arith.constant 0 : i32
    %c0_i32_1 = arith.constant 0 : i32
    return %arg1, %c0_i32, %c0_i32_0 : i32, i32, i32
  }
  func.func @transform_5(%arg0: i32, %arg1: i32) -> (i32, i32, i32) {
    %c0_i32 = arith.constant 0 : i32
    %c0_i32_0 = arith.constant 0 : i32
    %c0_i32_1 = arith.constant 0 : i32
    return %arg1, %c0_i32, %c0_i32_0 : i32, i32, i32
  }
  func.func @transform_6(%arg0: i32, %arg1: i32) -> (i32, i32, i32) {
    %c0_i32 = arith.constant 0 : i32
    %c0_i32_0 = arith.constant 0 : i32
    %c0_i32_1 = arith.constant 0 : i32
    return %arg1, %c0_i32, %c0_i32_0 : i32, i32, i32
  }
  func.func @transform_7(%arg0: i32, %arg1: i32) -> (i32, i32, i32) {
    %c0_i32 = arith.constant 0 : i32
    %c0_i32_0 = arith.constant 0 : i32
    %c0_i32_1 = arith.constant 0 : i32
    return %arg1, %c0_i32, %c0_i32_0 : i32, i32, i32
  }
  func.func @transform_8(%arg0: i32, %arg1: i32) -> (i32, i32, i32) {
    %c0_i32 = arith.constant 0 : i32
    %c0_i32_0 = arith.constant 0 : i32
    %c0_i32_1 = arith.constant 0 : i32
    return %arg1, %c0_i32, %c0_i32_0 : i32, i32, i32
  }
  func.func @transform_9(%arg0: i32, %arg1: i32) -> (i32, i32, i32) {
    %c0_i32 = arith.constant 0 : i32
    %c0_i32_0 = arith.constant 0 : i32
    %c0_i32_1 = arith.constant 0 : i32
    return %arg1, %c0_i32, %c0_i32_0 : i32, i32, i32
  }
  func.func @transform_10(%arg0: i32, %arg1: i32) -> (i32, i32, i32) {
    %c0_i32 = arith.constant 0 : i32
    %c0_i32_0 = arith.constant 0 : i32
    %c0_i32_1 = arith.constant 0 : i32
    return %arg1, %c0_i32, %c0_i32_0 : i32, i32, i32
  }
  func.func @transform_11(%arg0: i32, %arg1: i32) -> (i32, i32, i32) {
    %c0_i32 = arith.constant 0 : i32
    %c0_i32_0 = arith.constant 0 : i32
    %c0_i32_1 = arith.constant 0 : i32
    return %arg1, %c0_i32, %c0_i32_0 : i32, i32, i32
  }
  func.func @transform_12(%arg0: i32, %arg1: i32) -> (i32, i32, i32) {
    %c0_i32 = arith.constant 0 : i32
    %c0_i32_0 = arith.constant 0 : i32
    %c0_i32_1 = arith.constant 0 : i32
    return %arg1, %c0_i32, %c0_i32_0 : i32, i32, i32
  }
  func.func @transform_13(%arg0: i32, %arg1: i32) -> (i32, i32, i32) {
    %c0_i32 = arith.constant 0 : i32
    %c0_i32_0 = arith.constant 0 : i32
    %c0_i32_1 = arith.constant 0 : i32
    return %arg1, %c0_i32, %c0_i32_0 : i32, i32, i32
  }
  func.func @transform_14(%arg0: i32, %arg1: i32) -> (i32, i32, i32) {
    %c0_i32 = arith.constant 0 : i32
    %c0_i32_0 = arith.constant 0 : i32
    %c0_i32_1 = arith.constant 0 : i32
    return %arg0, %c0_i32, %c0_i32_0 : i32, i32, i32
  }
}

</mosaic_0001>

<bundles_post_ra>
// kernel: transformer_encoder_forward.1
= control target key start
LH: loop header
LB: loop body
LE: loop exit
PB: predicated region body
PF: predicated region fallthrough
CT: control target
= control target key end

     0   :  { %s3589_s0 = inlined_call_operand.vmem [shape: f32[2,16,128], index: 0, kind: input, shape index: {}]   ;;  %s3590_s1 = inlined_call_operand.vmem [shape: f32[2,1,16], index: 1, kind: input, shape index: {}]   ;;  %s3591_s2 = inlined_call_operand.hbm [shape: bf16[2,128,384], index: 2, kind: input, shape index: {}]   ;;  %s3592_s3 = inlined_call_operand.vmem [shape: f32[2,1,384], index: 3, kind: input, shape index: {}]   ;;  %s3593_s4 = inlined_call_operand.hbm [shape: bf16[2,128,128], index: 4, kind: input, shape index: {}]   ;;  %s3594_s5 = inlined_call_operand.vmem [shape: f32[2,1,128], index: 5, kind: input, shape index: {}]   ;;  %s3595_s6 = inlined_call_operand.vmem [shape: f32[2,1,128], index: 6, kind: input, shape index: {}]   ;;  %s3596_s7 = inlined_call_operand.vmem [shape: f32[2,1,128], index: 7, kind: input, shape index: {}]   ;;  %s3597_s8 = inlined_call_operand.vmem [shape: bf16[2,128,256], index: 8, kind: input, shape index: {}]   ;;  %s3598_s9 = inlined_call_operand.vmem [shape: f32[2,1,256], index: 9, kind: input, shape index: {}]   ;;  %s3599_s10 = inlined_call_operand.hbm [shape: bf16[2,256,128], index: 10, kind: input, shape index: {}]   ;;  %s3600_s11 = inlined_call_operand.vmem [shape: f32[2,1,128], index: 11, kind: input, shape index: {}]   ;;  %s3601_s12 = inlined_call_operand.vmem [shape: f32[2,1,128], index: 12, kind: input, shape index: {}]   ;;  %s3602_s13 = inlined_call_operand.vmem [shape: f32[2,1,128], index: 13, kind: input, shape index: {}]   ;;  %s3603_s14 = inlined_call_operand.vmem [shape: f32[2,8,128], index: 14, kind: output, shape index: {}]  }
   0x1   :  { %3615 = sst [smem:[#allocation19_spill]] %s3589_s0 }
   0x2   :  { %3616 = sst [smem:[#allocation20_spill]] %s3591_s2 }
   0x3   :  { %3617 = sst [smem:[#allocation21_spill]] %s3592_s3 }
   0x4   :  { %3618 = sst [smem:[#allocation22_spill]] %s3593_s4 }
   0x5   :  { %3619 = sst [smem:[#allocation23_spill]] %s3594_s5 }
   0x6   :  { %3620 = sst [smem:[#allocation24_spill]] %s3595_s6 }
   0x7   :  { %3621 = sst [smem:[#allocation25_spill]] %s3596_s7 }
   0x8   :  { %3622 = sst [smem:[#allocation26_spill]] %s3597_s8 }
   0x9   :  { %3623 = sst [smem:[#allocation27_spill]] %s3598_s9 }
   0xa   :  { %3624 = sst [smem:[#allocation28_spill]] %s3599_s10 }
   0xb   :  { %3625 = sst [smem:[#allocation29_spill]] %s3600_s11 }
   0xc   :  { %3626 = sst [smem:[#allocation30_spill]] %s3601_s12 }
   0xd   :  { %3627 = sst [smem:[#allocation31_spill]] %s3602_s13 }
   0xe   :  { %3628 = sst [smem:[#allocation32_spill]] %s3603_s14 }
   0xf   :  { %19 = vsyncpa [#allocation4], 0 }
  0x10   :  { %21 = vsyncpa [#allocation4 + $0x1], 0 }
  0x11   :  { %22 = vsyncpa [#allocation6], 0 }
  0x12   :  { %24 = vsyncpa [#allocation6 + $0x1], 0  ;;  %s3046_s29 = smov 0   ;;  %s3048_s30 = smov 0  }
  0x13   :  { %s3050_s15 = smov 0   ;;  %s3052_s16 = smov 0  }
  0x14   :  { %s3054_s17 = smov 0   ;;  %s3056_s18 = smov 0  }
  0x15   :  { %s3058_s19 = smov 0   ;;  %s3060_s20 = smov 0  }
  0x16 LB: > { %3629 = sst [smem:[#allocation10_spill]] %s2932_s30  ;;  %s3606_s21 = sadd.s32 4294967295, %s2956_s20   ;;  %s2956_s20 = sphi %s3060_s20, %s30_s20   ;;  %s2952_s19 = sphi %s3058_s19, %s3680_s19   ;;  %s2948_s18 = sphi %s3056_s18, %s3679_s18   ;;  %s2944_s17 = sphi %s3054_s17, %s3678_s17   ;;  %s2940_s16 = sphi %s3052_s16, %s3677_s16   ;;  %s2936_s15 = sphi %s3050_s15, %s3676_s15   ;;  %s2932_s30 = sphi %s3048_s30, %s3675_s30   ;;  %s2928_s29 = sphi %s3046_s29, %s3674_s29  }
  0x17   : > { %3630 = sst [smem:[#allocation11_spill]] %s2936_s15  ;;  %s39_s22 = sadd.s32 1, %s2948_s18 }
  0x18   : > { %3631 = sst [smem:[#allocation12_spill]] %s2948_s18  ;;  %p40_p0 = scmp.ge.s32.totalorder %s39_s22, 2 }
  0x19   : > { %3632 = sst [smem:[#allocation13_spill]] %s2952_s19  ;;  %s42_s23 = sadd.s32 1, %s2952_s19 }
  0x1a   : > { %3633 = sst [smem:[#allocation14_spill]] %s2956_s20  ;;  %s101_s24 = sadd.s32 1, %s2936_s15 }
  0x1b   : > { %p108_p1 = scmp.ne.s32.totalorder %s2936_s15, %s2932_s30  ;;  %s3682_s22 = smov (%p40_p0, %s39_s22), 0 }
  0x1c   : > { %3634 = sst [smem:[#allocation15_spill]] %s3682_s22  ;;  %s3684_s23 = smov (!%p40_p0, %s42_s23), %s2952_s19 }
  0x1d   : > { %s98_s25 = ssub.s32 %s2948_s18, %s3682_s22  ;;  %p109_p2 = scmp.eq.s32.totalorder %s2956_s20, 0 }
  0x1e   : > { %p44_p3 = scmp.ge.s32.totalorder %s3684_s23, 2  ;;  %p99_p4 = scmp.eq.s32.totalorder %s98_s25, 0 }
  0x1f   : > { %p110_p5 = por %p109_p2, %p108_p1  ;;  %p114_p6 = scmp.ne.s32.totalorder %s2932_s30, %s2928_s29 }
  0x20   : > { %s3686_s23 = smov (%p44_p3, %s3684_s23), 0  ;;  %p115_p7 = scmp.eq.s32.totalorder %s3606_s21, 0 }
  0x21   : > { %3635 = sst [smem:[#allocation16_spill]] %s3686_s23  ;;  %p2586_p8 = scmp.lt.s32.totalorder %s2956_s20, 4 }
  0x22   : > { %s3100_s26 = scalar_select %p99_p4, %s2936_s15, %s101_s24  }
  0x23   : > { %s3106_s27 = sand.u32 1, %s2936_s15   ;;  %p3108_p9 = por %p115_p7, %p114_p6 }
  0x24   : > { %3636 = sst [smem:[#allocation17_spill]] %s3100_s26  ;;  %s492_s22 = sand.u32 1, %s2956_s20  }
  0x25   : > { %s3637_s28 = scalar_select %p3108_p9, 1, 0 }
  0x26   : > { %p3113_p10 = pnand %p2586_p8, %p110_p5  ;;  %s2320_s29 = sshll.u32 %s3106_s27, 6 }
  0x27   : > { %s2418_s23 = sshll.u32 %s2948_s18, 10  ;;  %s3639_s4 = sld [smem:[#allocation22_spill]] }
  0x28   : > { %s496_s26 = scalar_lea.vmem [#allocation5], %s2320_s29  ;;  %s3127_s14 = scalar_lea.sflag [#allocation6], %s492_s22 }
  0x29   : > { %s503_s15 = sshll.u32 %s496_s26, 4  ;;  %p3133_p13 = pneg %p3113_p10  ;;  %s3124_s15 = int_to_ptr.vmem [resolvable:$true] %s503_s15 }
  0x2d   : > { %s3122_s21 = scalar_lea.hbm %s3639_s4, %s2418_s23  ;;  %s2801_s26 = scalar_lea.hbm %s3639_s4, 2048 }
  0x2e   : > { %s2796_s13 = scalar_lea.hbm %s3122_s21, 1024  ;;  %p2802_p2 = scmp.lt.u32.totalorder %s3122_s21, %s3639_s4 }
  0x2f   : > { %p2797_p12 = scmp.ne.s32.totalorder %s3122_s21, %s2796_s13  ;;  %p2803_p3 = scmp.lt.u32.totalorder %s2801_s26, %s2796_s13 }
  0x30   : > { %p2805_p5 = scmp.lt.u32.totalorder %s2796_s13, %s3122_s21 }
  0x31   : > { %p2799_p0 = pnand %p3133_p13, %p2797_p12  ;;  %p2804_p4 = por %p2803_p3, %p2802_p2 }
  0x33   : > { %p2800_p1 = pneg %p2799_p0  ;;  %p2806_p6 = por %p2805_p5, %p2804_p4 }
  0x35   : > { %p2807_p7 = pnand %p2806_p6, %p2800_p1 }
  0x37   : > { %2810 = shalt.err (!%p2807_p7)
}
  0x38   : > { %s2811_s22 = scalar_lea.vmem %s3124_s15, 1024  ;;  %s2958_s19 = smov [#allocation5]  }
  0x39   : > { %p2812_p8 = scmp.ne.s32.totalorder %s3124_s15, %s2811_s22  ;;  %s2816_s23 = sshll.u32 %s2958_s19, 4  ;;  %s2817_s23 = int_to_ptr.vmem [resolvable:$false] %s2816_s23 }
  0x3a   : > { %s2818_s29 = scalar_lea.vmem %s2817_s23, 2048  ;;  %p2819_p11 = scmp.lt.s32.totalorder %s3124_s15, %s2817_s23 }
  0x3b   : > { %p2814_p12 = pnand %p2812_p8, %p3133_p13  ;;  %p2820_p9 = scmp.lt.s32.totalorder %s2818_s29, %s2811_s22 }
  0x3d   : > { %p2815_p0 = pneg %p2814_p12  ;;  %p2821_p2 = por %p2820_p9, %p2819_p11 }
  0x3f   : > { %p2822_p3 = pnand %p2821_p2, %p2815_p0 }
  0x41   : > { %2825 = shalt.err (!%p2822_p3)
}
  0x42   : > { %s3609_s13 = smov 64   ;;  %s3610_s26 = smov 4  }
  0x43   : > { %2582 = dma.hbm_to_vmem [thread:$0]  (!%p3113_p10), %s3122_s21, 1024, %s3124_s15, %s3127_s14, %s3609_s13, %s3609_s13, %s3610_s26  }
  0x44   : > { %p583_p9 = scmp.lt.s32.totalorder %s2956_s20, 5  ;;  %p3641_p11 = scmp.ge.s32.totalorder %s2956_s20, 1 }
  0x45   : > { %s2566_s22 = smul.u32 192, %s3106_s27  ;;  %s3643_s2 = sld [smem:[#allocation20_spill]] }
  0x46   : > { %p3163_p1 = pnand %p3641_p11, %p583_p9  ;;  %s2567_s19 = smul.u32 3072, %s2948_s18 }
  0x47   : > { %s468_s11 = scalar_lea.vmem [#allocation3], %s2566_s22  ;;  %s2323_s15 = sshll.u32 %s3106_s27, 7 }
  0x48   : > { %s3642_s24 = scalar_select %p3163_p1, 1, 0 }
  0x49   : > { %s475_s9 = sshll.u32 %s468_s11, 4  ;;  %s465_s21 = scalar_lea.sflag [#allocation4], %s3106_s27  ;;  %s3174_s9 = int_to_ptr.vmem [resolvable:$true] %s475_s9 }
  0x4b   : > { %s3172_s4 = scalar_lea.hbm %s3643_s2, %s2567_s19  ;;  %s2831_s19 = scalar_lea.hbm %s3643_s2, 6144 }
  0x4c   : > { %s2826_s13 = scalar_lea.hbm %s3172_s4, 3072  ;;  %p2832_p7 = scmp.lt.u32.totalorder %s3172_s4, %s3643_s2 }
  0x4d   : > { %p2827_p4 = scmp.ne.s32.totalorder %s3172_s4, %s2826_s13  ;;  %p2833_p8 = scmp.lt.u32.totalorder %s2831_s19, %s2826_s13 }
  0x4e   : > { %p2835_p0 = scmp.lt.u32.totalorder %s2826_s13, %s3172_s4 }
  0x4f   : > { %p2829_p5 = pnand %p2827_p4, %p3133_p13  ;;  %p2834_p12 = por %p2833_p8, %p2832_p7 }
  0x51   : > { %p2830_p6 = pneg %p2829_p5  ;;  %p2836_p2 = por %p2835_p0, %p2834_p12 }
  0x53   : > { %p2837_p3 = pnand %p2836_p2, %p2830_p6 }
  0x55   : > { %2840 = shalt.err (!%p2837_p3)
}
  0x56   : > { %s2841_s11 = scalar_lea.vmem %s3174_s9, 3072  ;;  %s2961_s8 = smov [#allocation3]  }
  0x57   : > { %p2842_p9 = scmp.ne.s32.totalorder %s3174_s9, %s2841_s11  ;;  %s2846_s26 = sshll.u32 %s2961_s8, 4  ;;  %s2847_s26 = int_to_ptr.vmem [resolvable:$false] %s2846_s26 }
  0x58   : > { %s2848_s22 = scalar_lea.vmem %s2847_s26, 6144  ;;  %p2849_p5 = scmp.lt.s32.totalorder %s3174_s9, %s2847_s26 }
  0x59   : > { %p2844_p11 = pnand %p2842_p9, %p3133_p13  ;;  %p2850_p1 = scmp.lt.s32.totalorder %s2848_s22, %s2841_s11 }
  0x5b   : > { %p2845_p4 = pneg %p2844_p11  ;;  %p2851_p7 = por %p2850_p1, %p2849_p5 }
  0x5d   : > { %p2852_p8 = pnand %p2851_p7, %p2845_p4 }
  0x5f   : > { %2855 = shalt.err (!%p2852_p8)
}
  0x60   : > { %s2962_s13 = smov 192   ;;  %s2963_s19 = smov 12  }
  0x61   : > { %2579 = dma.hbm_to_vmem [thread:$0]  (!%p3113_p10), %s3172_s4, 3072, %s3174_s9, %s465_s21, %s2962_s13, %s2962_s13, %s2963_s19  }
  0x62   : > { %s2419_s23 = sshll.u32 %s2948_s18, 11  ;;  %s3644_s10 = sld [smem:[#allocation28_spill]] }
  0x63   : > { %s550_s26 = scalar_lea.vmem [#allocation7], %s2323_s15 }
  0x64   : > { %s557_s22 = sshll.u32 %s550_s26, 4  ;;  %s3209_s22 = int_to_ptr.vmem [resolvable:$true] %s557_s22 }
  0x68   : > { %s3205_s11 = scalar_lea.hbm %s3644_s10, %s2419_s23  ;;  %s2861_s21 = scalar_lea.hbm %s3644_s10, 4096 }
  0x69   : > { %s2856_s2 = scalar_lea.hbm %s3205_s11, 2048  ;;  %p2862_p0 = scmp.lt.u32.totalorder %s3205_s11, %s3644_s10 }
  0x6a   : > { %p2857_p1 = scmp.ne.s32.totalorder %s3205_s11, %s2856_s2  ;;  %p2863_p2 = scmp.lt.u32.totalorder %s2861_s21, %s2856_s2 }
  0x6b   : > { %p2865_p9 = scmp.lt.u32.totalorder %s2856_s2, %s3205_s11 }
  0x6c   : > { %p2859_p6 = pnand %p2857_p1, %p3133_p13  ;;  %p2864_p3 = por %p2863_p2, %p2862_p0 }
  0x6e   : > { %p2860_p12 = pneg %p2859_p6  ;;  %p2866_p11 = por %p2865_p9, %p2864_p3 }
  0x70   : > { %p2867_p4 = pnand %p2866_p11, %p2860_p12 }
  0x72   : > { %2870 = shalt.err (!%p2867_p4)
}
  0x73   : > { %s2871_s27 = scalar_lea.vmem %s3209_s22, 2048  ;;  %s2964_s15 = smov [#allocation7]  }
  0x74   : > { %p2872_p5 = scmp.ne.s32.totalorder %s3209_s22, %s2871_s27  ;;  %s2876_s23 = sshll.u32 %s2964_s15, 4  ;;  %s2877_s23 = int_to_ptr.vmem [resolvable:$false] %s2876_s23 }
  0x75   : > { %s2878_s29 = scalar_lea.vmem %s2877_s23, 4096  ;;  %p2879_p1 = scmp.lt.s32.totalorder %s3209_s22, %s2877_s23 }
  0x76   : > { %p2874_p7 = pnand %p2872_p5, %p3133_p13  ;;  %p2880_p6 = scmp.lt.s32.totalorder %s2878_s29, %s2871_s27 }
  0x78   : > { %p2875_p8 = pneg %p2874_p7  ;;  %p2881_p0 = por %p2880_p6, %p2879_p1 }
  0x7a   : > { %p2882_p2 = pnand %p2881_p0, %p2875_p8 }
  0x7c   : > { %2885 = shalt.err (!%p2882_p2)
}
  0x7d   : > { %s3645_s2 = smov 4   ;;  %s3646_s8 = smov 64  }
  0x7e   : > { %2585 = dma.hbm_to_vmem [thread:$0]  (!%p3113_p10), %s3205_s11, 2048, %s3209_s22, %s3127_s14, %s3646_s8, %s3646_s8, %s3645_s2  }
  0x7f   : > { %p3647_p13 = scmp.ne.s32.totalorder %s3642_s24, 0 }
  0x81   : > { %587 = sbr.rel (%p3647_p13) target bundleno = 3157 (0xc55), region = 76 }
  0x88   : > { %s3239_s12 = sand.u32 1, %s2932_s30   ;;  %p3648_p12 = scmp.ne.s32.totalorder %s3637_s28, 0 }
  0x89   : > { %s2568_s26 = smul.u32 192, %s3239_s12  ;;  %s590_s4 = scalar_lea.sflag [#allocation4], %s3239_s12 }
  0x8b   : > { %s3243_s9 = scalar_lea.vmem [#allocation3], %s2568_s26 }
  0x8c   : > { %2919 = dma.done.wait (%p3648_p12), %s590_s4, 3072  }
  0x8d   : > { %2921 = vsyncadd (%p3648_p12), %s590_s4, 4294964224  ;;  %s3649_s14 = sadd.s32 4294967295, %s2956_s20   ;;  %s2327_s24 = sshll.u32 %s3239_s12, 6 }
  0x8e   : > { %s598_s25 = sand.u32 1, %s3649_s14   ;;  %s3252_s22 = scalar_lea.vmem [#allocation5], %s2327_s24 }
  0x8f   : > { %s599_s11 = scalar_lea.sflag [#allocation6], %s598_s25 }
  0x90   : > { %2923 = dma.done.wait (%p3648_p12), %s599_s11, 3072  }
  0x91   : > { %2925 = vsyncadd (%p3648_p12), %s599_s11, 4294964224  ;;  %s2328_s21 = sshll.u32 %s3239_s12, 7  ;;  %p704_p10 = scmp.lt.s32.totalorder %s2944_s17, 1 }
  0x92   : > { %p712_p3 = scmp.lt.s32.totalorder %s2940_s16, 1  ;;  %s3650_s0 = sld [smem:[#allocation19_spill]] }
  0x93   : > { %s3688_s17 = smov (!%p704_p10, %s2944_s17), 1  ;;  %s3653_s3 = sld [smem:[#allocation21_spill]] }
  0x94   : > { %s3265_s13 = scalar_select %p712_p3, %s2940_s16, 1 }
  0x95   : > { %s2420_s28 = sshll.u32 %s3688_s17, 4  ;;  %s3655_s30 = sld [smem:[#allocation26_spill]] }
  0x96   : > { %s2569_s8 = smul.u32 3, %s3265_s13  ;;  %s2421_s23 = sshll.u32 %s3265_s13, 7 }
  0x97   : > { %s3657_s14 = sld [smem:[#allocation27_spill]]  ;;  %s3659_s19 = sld [smem:[#allocation30_spill]] }
  0x98   : > { %s708_s2 = scalar_lea.vmem %s3650_s0, %s2420_s28  ;;  %s2333_s28 = sshll.u32 %s3265_s13, 1 }
  0x99   : > { %s3287_s18 = scalar_lea.vmem %s3653_s3, %s2569_s8  ;;  %s3658_s8 = sld [smem:[#allocation29_spill]] }
  0x9a   : > { %s3660_s6 = sld [smem:[#allocation31_spill]]  ;;  %s2334_s0 = sshll.u32 %s3688_s17, 3 }
  0x9b   : > { %s3298_s12 = scalar_lea.vmem %s3655_s30, %s2421_s23  ;;  %s3661_s29 = sld [smem:[#allocation32_spill]] }
  0x9c   : > { %3656 = sst [smem:[#allocation18_spill]] %s3298_s12  ;;  %s3323_s4 = scalar_lea.vmem [#allocation7], %s2328_s21 }
  0x9d   : > { %s3303_s25 = scalar_lea.vmem %s3657_s14, %s2333_s28  ;;  %s739_s27 = scalar_lea.vmem %s3659_s19, %s3265_s13 }
  0x9e   : > { %p2335_p9 = scmp.ne.s32.totalorder %s2940_s16, 0 }
  0x9f   : > { %s736_s11 = scalar_lea.vmem %s3658_s8, %s3265_s13  ;;  %v752_v0 = vld [vmem:[%s708_s2] sm:$0xff] (!%p2335_p9)  ;;  %v753_v1 = vld [vmem:[%s708_s2 + $0x8] sm:$0xff] (!%p2335_p9) }
  0xa0   : > { %s742_s5 = scalar_lea.vmem %s3660_s6, %s3265_s13  ;;  %751 = sbr.rel (%p2335_p9) target bundleno = 167 (0xa7), region = 92  ;;  %754 = vst [vmem:[#allocation2] sm:$0xff] (!%p2335_p9), %v752_v0  ;;  %755 = vst [vmem:[#allocation2 + $0x8] sm:$0xff] (!%p2335_p9), %v753_v1 }
  0xa1   : > { %s3321_s12 = scalar_lea.vmem %s3661_s29, %s2334_s0 }
  0xa7 PF: > { %v2676_v2 = vld [vmem:[%s3243_s9 + $0x4] ss:$12 sps:$4 sm:$0xff]   ;;  %v2678_v3 = vld [vmem:[%s3243_s9] ss:$12 sps:$4 sm:$0xff]   ;;  %v2965_v4 = vmov 0   ;;  %v2966_v5 = vmov 0.0   ;;  %v793_v31 = vlaneseq  ;;  %s3662_s7 = scalar_lea.vmem %s3590_s1, %s3688_s17 }
  0xa8   : > { %968 = vmatprep.mubr.bf16.mxu0 %v2965_v4  ;;  %2478 = vmatprep.subr.bf16.mxu1 %v2966_v5  ;;  %v2679_v6 = vld [vmem:[%s3243_s9 + $0x1c] ss:$12 sps:$4 sm:$0xff]   ;;  %v2681_v7 = vld [vmem:[%s3243_s9 + $0x18] ss:$12 sps:$4 sm:$0xff]   ;;  %v2682_v8 = vld [vmem:[%s3243_s9 + $0x34] ss:$12 sps:$4 sm:$0xff]  }
  0xa9   : > { %936 = vmatprep.subr.bf16.mxu0 %v2676_v2  ;;  %v2684_v9 = vld [vmem:[%s3243_s9 + $0x30] ss:$12 sps:$4 sm:$0xff]   ;;  %v2685_v10 = vld [vmem:[%s3243_s9 + $0x4c] ss:$12 sps:$4 sm:$0xff]   ;;  %v2687_v11 = vld [vmem:[%s3243_s9 + $0x48] ss:$12 sps:$4 sm:$0xff]  }
  0xaa   : > { %937 = vmatpush1.bf16.msra.mxu0 %v2678_v3  ;;  %v2688_v12 = vld [vmem:[%s3243_s9 + $0x64] ss:$12 sps:$4 sm:$0xff]   ;;  %v2700_v13 = vld [vmem:[%s3243_s9 + $0x8] ss:$12 sps:$4 sm:$0xff]   ;;  %v2701_v14 = vld [vmem:[%s3243_s9 + $0x20] ss:$12 sps:$4 sm:$0xff]  }
  0xab   : > { %938 = vmatprep.subr.bf16.mxu0 %v2679_v6  ;;  %2479 = vmatpush3.bf16.msra.mxu1 %v2700_v13  ;;  %v2690_v15 = vld [vmem:[%s3243_s9 + $0x60] ss:$12 sps:$4 sm:$0xff]   ;;  %v2691_v16 = vld [vmem:[%s3243_s9 + $0x7c] ss:$12 sps:$4 sm:$0xff]   ;;  %v2693_v17 = vld [vmem:[%s3243_s9 + $0x78] ss:$12 sps:$4 sm:$0xff]  }
  0xac   : > { %2480 = vmatprep.subr.bf16.mxu1 %v2966_v5  ;;  %v2694_v18 = vld [vmem:[%s3243_s9 + $0x94] ss:$12 sps:$4 sm:$0xff]   ;;  %v2702_v19 = vld [vmem:[%s3243_s9 + $0x38] ss:$12 sps:$4 sm:$0xff]   ;;  %v2703_v20 = vld [vmem:[%s3243_s9 + $0x50] ss:$12 sps:$4 sm:$0xff]  }
  0xad   : > { %v2696_v21 = vld [vmem:[%s3243_s9 + $0x90] ss:$12 sps:$4 sm:$0xff]   ;;  %v2697_v22 = vld [vmem:[%s3243_s9 + $0xac] ss:$12 sps:$4 sm:$0xff]   ;;  %v2704_v23 = vld [vmem:[%s3243_s9 + $0x68] ss:$12 sps:$4 sm:$0xff]  }
  0xae   : > { %939 = vmatpush1.bf16.msra.mxu0 %v2681_v7  ;;  %v2699_v24 = vld [vmem:[%s3243_s9 + $0xa8] ss:$12 sps:$4 sm:$0xff]   ;;  %v3354_v26 = vld [vmem:[#allocation2 + $0x8] sm:$0xff]  ;;  %v2705_v27 = vld [vmem:[%s3243_s9 + $0x80] ss:$12 sps:$4 sm:$0xff]   ;;  %vm2967_vm0 = vmmov 0  }
  0xaf   : > { %940 = vmatprep.subr.bf16.mxu0 %v2682_v8  ;;  %2481 = vmatpush3.bf16.msra.mxu1 %v2701_v14  ;;  %v3352_v25 = vld [vmem:[#allocation2] sm:$0xff]  ;;  %v2706_v29 = vld [vmem:[%s3243_s9 + $0x98] ss:$12 sps:$4 sm:$0xff]   ;;  %v3373_v32 = vshrl.u32 %v793_v31, 7  ;;  %vm1032_vm1 = vcmask 261120   ;;  %vm1080_vm2 = vcmask 130048  }
  0xb0   : > { %2482 = vmatprep.subr.bf16.mxu1 %v2966_v5  ;;  %v758_v28 = vpack.c.bf16 %v3354_v26, %v3352_v25  ;;  %v2707_v30 = vld [vmem:[%s3243_s9 + $0xb0] ss:$12 sps:$4 sm:$0xff]   ;;  %2494 = vmatprep.mubr.msk.bf16.mxu1 %vm2967_vm0, %v2966_v5  ;;  %s2969_s17 = smov 32   ;;  %s2970_s20 = smov 64   ;;  %vm1540_vm3 = vcmask 523264   ;;  %vm1543_vm4 = vcmask 785408  }
  0xb1   : > { %v795_v33 = vsub.s32 0, %v3373_v32  ;;  %v791_v34 = vld [vmem:[%s3287_s18] sm:$0x7]  ;;  %v799_v35 = vsub.s32 1, %v3373_v32  ;;  %v803_v51 = vsub.s32 2, %v3373_v32  ;;  %s2968_s18 = smov 96  }
  0xb2   : > { %941 = vmatpush1.bf16.msra.mxu0 %v2684_v9  ;;  %v3397_v60 = vld [vmem:[%s3662_s7] ss:$0 sm:$0xff]  ;;  %s3663_s9 = sld [smem:[#allocation18_spill]]  ;;  %s3664_s15 = sld [smem:[#allocation23_spill]] }
  0xb3   : > { %942 = vmatprep.subr.bf16.mxu0 %v2685_v10  ;;  %2483 = vmatpush3.bf16.msra.mxu1 %v2702_v19  ;;  %v796_v36 = vrot.slane %v791_v34, %v795_v33  ;;  %v800_v38 = vrot.slane %v791_v34, %v799_v35  ;;  %v804_v52 = vrot.slane %v791_v34, %v803_v51  ;;  %s3666_s26 = sld [smem:[#allocation24_spill]]  ;;  %s3668_s19 = sld [smem:[#allocation25_spill]]  ;;  %v2396_v32 = vld [vmem:[%s736_s11] ss:$0 sm:$0xff] }
  0xb4   : > { %2484 = vmatprep.subr.bf16.mxu1 %v2966_v5  ;;  %p2415_p11 = scmp.ne.s32.totalorder %s2940_s16, 1 }
  0xb6   : > { %943 = vmatpush1.bf16.msra.mxu0 %v2687_v11 }
  0xb7   : > { %944 = vmatprep.subr.bf16.mxu0 %v2688_v12  ;;  %2485 = vmatpush3.bf16.msra.mxu1 %v2703_v20 }
  0xb8   : > { %2486 = vmatprep.subr.bf16.mxu1 %v2966_v5  ;;  %s3665_s2 = scalar_lea.vmem %s3664_s15, %s3265_s13 }
  0xb9   : > { %s3667_s14 = scalar_lea.vmem %s3666_s26, %s3265_s13  ;;  %s3669_s0 = scalar_lea.vmem %s3668_s19, %s3265_s13 }
  0xba   : > { %945 = vmatpush1.bf16.msra.mxu0 %v2690_v15 }
  0xbb   : > { %946 = vmatprep.subr.bf16.mxu0 %v2691_v16  ;;  %2487 = vmatpush3.bf16.msra.mxu1 %v2704_v23 }
  0xbc   : > { %2488 = vmatprep.subr.bf16.mxu1 %v2966_v5 }
  0xbe   : > { %947 = vmatpush1.bf16.msra.mxu0 %v2693_v17 }
  0xbf   : > { %948 = vmatprep.subr.bf16.mxu0 %v2694_v18  ;;  %2489 = vmatpush3.bf16.msra.mxu1 %v2705_v27 }
  0xc0   : > { %2490 = vmatprep.subr.bf16.mxu1 %v2966_v5 }
  0xc2   : > { %949 = vmatpush1.bf16.msra.mxu0 %v2696_v21 }
  0xc3   : > { %950 = vmatprep.subr.bf16.mxu0 %v2697_v22  ;;  %2491 = vmatpush3.bf16.msra.mxu1 %v2706_v29 }
  0xc4   : > { %2492 = vmatprep.subr.bf16.mxu1 %v2966_v5 }
  0xc6   : > { %951 = vmatpush1.bf16.msra.mxu0 %v2699_v24 }
  0xc7   : > { %2522 = vmatprep.subr.bf16.mxu0 %v2966_v5  ;;  %2493 = vmatpush3.bf16.msra.mxu1 %v2707_v30 }
  0xc8   : > { %2498 = vmatprep.subr.bf16.mxu1 %v2966_v5 }
  0xc9   : > { %969 = vmatmul.mubr.bf16.vlgmr.msra.gmra.mrb[0].mxu0 %v758_v28 }
  0xca   : > { %2524 = vmatprep.mubr.msk.bf16.mxu0 %vm2967_vm0, %v2966_v5  ;;  %2495 = vmatmul.mubr.bf16.vlgmr.msra.gmra.mrb[0].mxu1 %v758_v28 }
  0xcb   : > { %2500 = vmatprep.mubr.msk.bf16.mxu1 %vm2967_vm0, %v2966_v5 }
 0x19c   : > { %v970_v37 = vpop.f32.mrb[0].mxu0 }
 0x19d   : > { %v971_v39 = vadd.f32 %v970_v37, %v796_v36  ;;  %v972_v40 = vpop.f32.mrb[1].mxu0  ;;  %v1013_v53 = vpop.f32.mrb[0].mxu1 }
 0x19e   : > { %v974_v41 = vpop.f32.mrb[2].mxu0  ;;  %v973_v44 = vadd.f32 %v972_v40, %v800_v38  ;;  %v1014_v54 = vadd.f32 %v1013_v53, %v804_v52  ;;  %v2496_v55 = vpop.f32.mrb[1].mxu1 }
 0x19f   : > { %v975_v42 = vadd.f32 %v974_v41, %v796_v36  ;;  %v976_v43 = vpop.f32.mrb[3].mxu0  ;;  %v1020_v46 = vmul.f32 0.17677669, %v971_v39  ;;  %v1016_v56 = vpop.f32.mrb[2].mxu1 }
 0x1a0   : > { %v977_v45 = vadd.f32 %v976_v43, %v800_v38  ;;  %v1017_v57 = vadd.f32 %v1016_v56, %v804_v52  ;;  %v2497_v58 = vpop.f32.mrb[3].mxu1 }
 0x1a1   : > { %v1021_v47 = vmul.f32 0.17677669, %v975_v42 }
 0x1a2   : > { %v1030_v48 = vpack.c.bf16 %v977_v45, %v973_v44  ;;  %v3388_v59 = vpack.c.bf16 %v1017_v57, %v1014_v54 }
 0x1a3   : > { %v1029_v49 = vpack.c.bf16 %v1021_v47, %v1020_v46 }
 0x1a4   : > { %v1037_v50 = vsel %vm1032_vm1, %v1030_v48, 0 }
 0x1a5   : > { %2499 = vmatpush3.bf16.xpose.msra.mxu1 %v1037_v50 }
 0x1a6   : > { %2504 = vmatprep.subr.bf16.mxu1 %v2966_v5 }
 0x1ac   : > { %2501 = vmatmul.mubr.msk.bf16.vlgmr.msra.gmra.mrb[4].mxu1 %vm1032_vm1, %v1029_v49 }
 0x1ad   : > { %2506 = vmatprep.mubr.msk.bf16.mxu1 %vm2967_vm0, %v2966_v5  ;;  %2505 = vmatpush3.bf16.msra.mxu1 %v3388_v59 }
 0x1ae   : > { %2510 = vmatprep.subr.bf16.mxu1 %v2966_v5 }
 0x27f   : > { %v1073_v61 = vpop.f32.mrb[4].mxu1 }
 0x280   : > { %v1074_v62 = vadd.f32 %v3397_v60, %v1073_v61  ;;  %v2502_v63 = vpop.f32.mrb[5].mxu1 }
 0x281   : > { %v1076_v0 = vpop.f32.mrb[6].mxu1 }
 0x282   : > { %v1077_v1 = vadd.f32 %v3397_v60, %v1076_v0  ;;  %v2503_v2 = vpop.f32.mrb[7].mxu1  ;;  %v1081_v3 = vsel %vm1080_vm2, %v1074_v62, -inf }
 0x283   : > { %1082 = vmax.xlane.f32.xlu0 %v1081_v3 }
 0x284   : > { %v1084_v6 = vsel %vm1080_vm2, %v1077_v1, -inf }
 0x287   : > { %1085 = vmax.xlane.f32.xlu0 %v1084_v6 }
 0x29d   : > { %1152 = vrot.lane.b32.xlu0 %v1030_v48, %s2968_s18 }
 0x2a1   : > { %1395 = vrot.lane.b32.xlu0 %v1030_v48, %s2969_s17 }
 0x310   : > { %v1083_v7 = vpop.xlane.xlu0 %1082 }
 0x311   : > { %v1087_v8 = vsub.f32 %v1074_v62, %v1083_v7 }
 0x313   : > { %v1089_v9 = vmul.f32 1.442695, %v1087_v8 }
 0x314   : > { %v1086_v10 = vpop.xlane.xlu0 %1085 }
 0x315   : > { %2756 = vpow2.f32 %v1089_v9  ;;  %v1088_v11 = vsub.f32 %v1077_v1, %v1086_v10 }
 0x317   : > { %v1091_v12 = vmul.f32 1.442695, %v1088_v11 }
 0x318   : > { %v1153_v20 = vpop.permute.xlu0 %1152 }
 0x319   : > { %2758 = vpow2.f32 %v1091_v12  ;;  %v1158_v31 = vsel %vm1032_vm1, %v1153_v20, 0 }
 0x31c   : > { %v1396_v29 = vpop.permute.xlu0 %1395 }
 0x31d   : > { %v1401_v36 = vsel %vm1032_vm1, %v1396_v29, 0 }
 0x31f   : > { %v2757_v13 = vpop.eup %2756 }
 0x320   : > { %v1093_v14 = vsel %vm1080_vm2, %v2757_v13, 0.0 }
 0x321   : > { %1094 = vadd.xlane.f32.xlu1 %v1093_v14 }
 0x323   : > { %v2759_v15 = vpop.eup %2758 }
 0x324   : > { %v1096_v16 = vsel %vm1080_vm2, %v2759_v15, 0.0 }
 0x325   : > { %1097 = vadd.xlane.f32.xlu1 %v1096_v16 }
 0x336   : > { %1149 = vrot.lane.b32.xlu1 %v1029_v49, %s2968_s18 }
 0x33a   : > { %1274 = vrot.lane.b32.xlu1 %v1030_v48, %s2970_s20 }
 0x33e   : > { %1272 = vrot.lane.b32.xlu1 %v1029_v49, %s2970_s20 }
 0x342   : > { %1393 = vrot.lane.b32.xlu1 %v1029_v49, %s2969_s17 }
 0x3ae   : > { %v1095_v17 = vpop.xlane.xlu1 %1094 }
 0x3af   : > { %2760 = vrcp.f32 %v1095_v17 }
 0x3b2   : > { %v1098_v18 = vpop.xlane.xlu1 %1097 }
 0x3b3   : > { %2762 = vrcp.f32 %v1098_v18 }
 0x3b6   : > { %v1150_v19 = vpop.permute.xlu1 %1149 }
 0x3b9   : > { %v2761_v22 = vpop.eup %2760 }
 0x3ba   : > { %v1275_v21 = vpop.permute.xlu1 %1274  ;;  %v1101_v27 = vmul.f32 %v2761_v22, %v2757_v13 }
 0x3bb   : > { %v1280_v23 = vsel %vm1032_vm1, %v1275_v21, 0 }
 0x3bc   : > { %2523 = vmatpush3.bf16.xpose.msra.mxu0 %v1280_v23 }
 0x3bd   : > { %v2763_v24 = vpop.eup %2762  ;;  %2534 = vmatprep.subr.bf16.mxu0 %v2966_v5 }
 0x3be   : > { %v1102_v28 = vmul.f32 %v2763_v24, %v2759_v15  ;;  %v1273_v34 = vpop.permute.xlu1 %1272 }
 0x3c0   : > { %v1103_v30 = vpack.c.bf16 %v1102_v28, %v1101_v27 }
 0x3c2   : > { %2507 = vmatmul.mubr.msk.bf16.vlgmr.msra.gmra.mrb[8].mxu1 %vm1080_vm2, %v1103_v30  ;;  %v1394_v37 = vpop.permute.xlu1 %1393 }
 0x3c3   : > { %2511 = vmatpush3.bf16.xpose.msra.mxu1 %v1158_v31  ;;  %2525 = vmatmul.mubr.msk.bf16.vlgmr.msra.gmra.mrb[4].mxu0 %vm1032_vm1, %v1273_v34 }
 0x3c4   : > { %2535 = vmatpush3.bf16.xpose.msra.mxu0 %v1401_v36  ;;  %2512 = vmatprep.mubr.msk.bf16.mxu1 %vm2967_vm0, %v2966_v5 }
 0x3c5   : > { %2536 = vmatprep.mubr.msk.bf16.mxu0 %vm2967_vm0, %v2966_v5  ;;  %2516 = vmatprep.subr.bf16.mxu1 %v2966_v5 }
 0x3c6   : > { %2546 = vmatprep.subr.bf16.mxu0 %v2966_v5 }
 0x3ca   : > { %2513 = vmatmul.mubr.msk.bf16.vlgmr.msra.gmra.mrb[12].mxu1 %vm1032_vm1, %v1150_v19 }
 0x3cb   : > { %2537 = vmatmul.mubr.msk.bf16.vlgmr.msra.gmra.mrb[8].mxu0 %vm1032_vm1, %v1394_v37  ;;  %2518 = vmatprep.mubr.msk.bf16.mxu1 %vm2967_vm0, %v2966_v5 }
 0x3cc   : > { %2562 = vmatprep.mubr.msk.bf16.mxu0 %vm2967_vm0, %v2966_v5 }
 0x495   : > { %v3429_v38 = vpop.f32.mrb[8].mxu1 }
 0x496   : > { %v2508_v39 = vpop.f32.mrb[9].mxu1  ;;  %v1316_v40 = vpop.f32.mrb[4].mxu0 }
 0x497   : > { %v3431_v41 = vpop.f32.mrb[10].mxu1  ;;  %v2526_v42 = vpop.f32.mrb[5].mxu0  ;;  %v1317_v52 = vadd.f32 %v3397_v60, %v1316_v40 }
 0x498   : > { %v2509_v43 = vpop.f32.mrb[11].mxu1  ;;  %v1319_v44 = vpop.f32.mrb[6].mxu0 }
 0x499   : > { %v2527_v45 = vpop.f32.mrb[7].mxu0  ;;  %v1320_v62 = vadd.f32 %v3397_v60, %v1319_v44  ;;  %v1323_v63 = vsel %vm1080_vm2, %v1317_v52, -inf }
 0x49b   : > { %v1326_v2 = vsel %vm1080_vm2, %v1320_v62, -inf }
 0x49d   : > { %v1194_v46 = vpop.f32.mrb[12].mxu1 }
 0x49e   : > { %v1195_v47 = vadd.f32 %v3397_v60, %v1194_v46  ;;  %v2514_v48 = vpop.f32.mrb[13].mxu1  ;;  %v1437_v49 = vpop.f32.mrb[8].mxu0 }
 0x49f   : > { %v1197_v50 = vpop.f32.mrb[14].mxu1  ;;  %v2538_v51 = vpop.f32.mrb[9].mxu0  ;;  %v1438_v1 = vadd.f32 %v3397_v60, %v1437_v49 }
 0x4a0   : > { %v1198_v53 = vadd.f32 %v3397_v60, %v1197_v50  ;;  %v2515_v54 = vpop.f32.mrb[15].mxu1  ;;  %v1440_v55 = vpop.f32.mrb[10].mxu0  ;;  %v1201_v56 = vsel %vm1080_vm2, %v1195_v47, -inf }
 0x4a1   : > { %v2539_v57 = vpop.f32.mrb[11].mxu0  ;;  %1202 = vmax.xlane.f32.xlu0 %v1201_v56  ;;  %v1441_v58 = vadd.f32 %v3397_v60, %v1440_v55  ;;  %v1444_v3 = vsel %vm1080_vm2, %v1438_v1, -inf }
 0x4a2   : > { %v1204_v61 = vsel %vm1080_vm2, %v1198_v53, -inf }
 0x4a3   : > { %1205 = vmax.xlane.f32.xlu1 %v1204_v61  ;;  %v1447_v0 = vsel %vm1080_vm2, %v1441_v58, -inf }
 0x4a5   : > { %1324 = vmax.xlane.f32.xlu0 %v1323_v63 }
 0x4a7   : > { %1448 = vmax.xlane.f32.xlu1 %v1447_v0 }
 0x4a9   : > { %1327 = vmax.xlane.f32.xlu0 %v1326_v2 }
 0x4ad   : > { %1445 = vmax.xlane.f32.xlu0 %v1444_v3  ;;  %v2708_v3 = vld [vmem:[%s3252_s22] sm:$0xff]  }
 0x4ae   : > { %2547 = vmatpush3.bf16.msra.mxu0 %v2708_v3  ;;  %v2722_v3 = vld [vmem:[%s3663_s9 + $0x20] ss:$8 sps:$4 sm:$0xff]  }
 0x4af   : > { %2548 = vmatprep.subr.bf16.mxu0 %v2966_v5 }
 0x52e   : > { %v1203_v6 = vpop.xlane.xlu0 %1202 }
 0x52f   : > { %v1207_v15 = vsub.f32 %v1195_v47, %v1203_v6  ;;  %v2709_v6 = vld [vmem:[%s3252_s22 + $0x8] sm:$0xff]  }
 0x530   : > { %v1206_v7 = vpop.xlane.xlu1 %1205  ;;  %2549 = vmatpush3.bf16.msra.mxu0 %v2709_v6  ;;  %v2727_v6 = vld [vmem:[%s3663_s9 + $0x34] ss:$8 sps:$4 sm:$0xff]  }
 0x531   : > { %v1208_v16 = vsub.f32 %v1198_v53, %v1206_v7  ;;  %v1209_v20 = vmul.f32 1.442695, %v1207_v15  ;;  %v2710_v7 = vld [vmem:[%s3252_s22 + $0x10] sm:$0xff]   ;;  %2550 = vmatprep.subr.bf16.mxu0 %v2966_v5 }
 0x532   : > { %v1325_v8 = vpop.xlane.xlu0 %1324  ;;  %v2714_v15 = vld [vmem:[%s3252_s22 + $0x30] sm:$0xff]  }
 0x533   : > { %v1329_v9 = vsub.f32 %v1317_v52, %v1325_v8  ;;  %v1211_v21 = vmul.f32 1.442695, %v1208_v16  ;;  %v2711_v8 = vld [vmem:[%s3252_s22 + $0x18] sm:$0xff]  }
 0x534   : > { %v1449_v10 = vpop.xlane.xlu1 %1448  ;;  %2551 = vmatpush3.bf16.msra.mxu0 %v2710_v7  ;;  %v2725_v7 = vld [vmem:[%s3663_s9 + $0x30] ss:$8 sps:$4 sm:$0xff]  }
 0x535   : > { %v1331_v11 = vmul.f32 1.442695, %v1329_v9  ;;  %v1451_v12 = vsub.f32 %v1441_v58, %v1449_v10  ;;  %2552 = vmatprep.subr.bf16.mxu0 %v2966_v5  ;;  %v2712_v9 = vld [vmem:[%s3252_s22 + $0x20] sm:$0xff]  }
 0x536   : > { %v1328_v13 = vpop.xlane.xlu0 %1327 }
 0x537   : > { %2764 = vpow2.f32 %v1331_v11  ;;  %v1330_v14 = vsub.f32 %v1320_v62, %v1328_v13  ;;  %v1454_v17 = vmul.f32 1.442695, %v1451_v12  ;;  %v2713_v11 = vld [vmem:[%s3252_s22 + $0x28] sm:$0xff]  }
 0x538   : > { %2553 = vmatpush3.bf16.msra.mxu0 %v2711_v8  ;;  %v2730_v8 = vld [vmem:[%s3663_s9 + $0x44] ss:$8 sps:$4 sm:$0xff]  }
 0x539   : > { %v1333_v60 = vmul.f32 1.442695, %v1330_v14  ;;  %2554 = vmatprep.subr.bf16.mxu0 %v2966_v5 }
 0x53a   : > { %v1446_v18 = vpop.xlane.xlu0 %1445 }
 0x53b   : > { %2766 = vpow2.f32 %v1333_v60  ;;  %v1450_v19 = vsub.f32 %v1438_v1, %v1446_v18  ;;  %v2715_v60 = vld [vmem:[%s3252_s22 + $0x38] sm:$0xff]  }
 0x53c   : > { %2768 = vpow2.f32 %v1454_v17  ;;  %2555 = vmatpush3.bf16.msra.mxu0 %v2712_v9  ;;  %v2728_v9 = vld [vmem:[%s3663_s9 + $0x40] ss:$8 sps:$4 sm:$0xff]  }
 0x53d   : > { %v1452_v22 = vmul.f32 1.442695, %v1450_v19  ;;  %2556 = vmatprep.subr.bf16.mxu0 %v2966_v5 }
 0x53f   : > { %2770 = vpow2.f32 %v1452_v22 }
 0x540   : > { %2772 = vpow2.f32 %v1209_v20  ;;  %2557 = vmatpush3.bf16.msra.mxu0 %v2713_v11  ;;  %v2736_v11 = vld [vmem:[%s3663_s9 + $0x64] ss:$8 sps:$4 sm:$0xff]  }
 0x541   : > { %v2765_v23 = vpop.eup %2764  ;;  %2774 = vpow2.f32 %v1211_v21  ;;  %2558 = vmatprep.subr.bf16.mxu0 %v2966_v5 }
 0x542   : > { %v1335_v24 = vsel %vm1080_vm2, %v2765_v23, 0.0 }
 0x543   : > { %1336 = vadd.xlane.f32.xlu0 %v1335_v24 }
 0x544   : > { %2559 = vmatpush3.bf16.msra.mxu0 %v2714_v15  ;;  %v2740_v15 = vld [vmem:[%s3323_s4 + $0x40] sm:$0xff]  }
 0x545   : > { %v2767_v27 = vpop.eup %2766  ;;  %2560 = vmatprep.subr.bf16.mxu0 %v2966_v5 }
 0x546   : > { %v1338_v28 = vsel %vm1080_vm2, %v2767_v27, 0.0  ;;  %v2769_v29 = vpop.eup %2768 }
 0x547   : > { %1339 = vadd.xlane.f32.xlu1 %v1338_v28  ;;  %v1459_v36 = vsel %vm1080_vm2, %v2769_v29, 0.0 }
 0x548   : > { %2561 = vmatpush3.bf16.msra.mxu0 %v2715_v60  ;;  %v2743_v60 = vld [vmem:[%s3323_s4 + $0x8] sm:$0xff]  }
 0x549   : > { %v2771_v30 = vpop.eup %2770  ;;  %2456 = vmatprep.subr.bf16.mxu0 %v2740_v15 }
 0x54a   : > { %v2773_v31 = vpop.eup %2772  ;;  %v1456_v34 = vsel %vm1080_vm2, %v2771_v30, 0.0 }
 0x54b   : > { %v2775_v37 = vpop.eup %2774  ;;  %1457 = vadd.xlane.f32.xlu0 %v1456_v34  ;;  %1460 = vadd.xlane.f32.xlu1 %v1459_v36  ;;  %v1213_v39 = vsel %vm1080_vm2, %v2773_v31, 0.0 }
 0x54c   : > { %v1216_v40 = vsel %vm1080_vm2, %v2775_v37, 0.0 }
 0x54f   : > { %1214 = vadd.xlane.f32.xlu0 %v1213_v39  ;;  %1217 = vadd.xlane.f32.xlu1 %v1216_v40 }
 0x560   : > { %1346 = vrot.lane.b32.xlu1 %v3388_v59, %s2970_s20 }
 0x564   : > { %1467 = vrot.lane.b32.xlu1 %v3388_v59, %s2969_s17 }
 0x565   : > { %1225 = vrot.lane.b32.xlu0 %v3388_v59, %s2968_s18 }
 0x5d0   : > { %v1337_v42 = vpop.xlane.xlu0 %1336 }
 0x5d4   : > { %v1340_v43 = vpop.xlane.xlu1 %1339 }
 0x5d8   : > { %v1458_v44 = vpop.xlane.xlu0 %1457  ;;  %v1461_v45 = vpop.xlane.xlu1 %1460 }
 0x5dc   : > { %v1215_v46 = vpop.xlane.xlu0 %1214  ;;  %v1218_v47 = vpop.xlane.xlu1 %1217 }
 0x5dd   : > { %2776 = vrcp.f32 %v1215_v46 }
 0x5de   : > { %2778 = vrcp.f32 %v1218_v47 }
 0x5df   : > { %2780 = vrcp.f32 %v1340_v43 }
 0x5e0   : > { %v1226_v48 = vpop.permute.xlu0 %1225  ;;  %2782 = vrcp.f32 %v1337_v42  ;;  %v1347_v54 = vpop.permute.xlu1 %1346 }
 0x5e1   : > { %2517 = vmatpush3.bf16.msra.mxu1 %v1226_v48  ;;  %2784 = vrcp.f32 %v1458_v44  ;;  %v2369_v48 = vld [vmem:[%s3665_s2] ss:$0 sm:$0xff] }
 0x5e2   : > { %2528 = vmatprep.subr.bf16.mxu1 %v2966_v5  ;;  %2786 = vrcp.f32 %v1461_v45 }
 0x5e4   : > { %v1468_v63 = vpop.permute.xlu1 %1467 }
 0x5e7   : > { %v2777_v49 = vpop.eup %2776 }
 0x5e8   : > { %v2779_v50 = vpop.eup %2778  ;;  %v1221_v51 = vmul.f32 %v2777_v49, %v2773_v31 }
 0x5e9   : > { %v1222_v52 = vmul.f32 %v2779_v50, %v2775_v37  ;;  %v2781_v53 = vpop.eup %2780 }
 0x5ea   : > { %v2783_v55 = vpop.eup %2782  ;;  %v1344_v56 = vmul.f32 %v2781_v53, %v2767_v27 }
 0x5eb   : > { %v1223_v59 = vpack.c.bf16 %v1222_v52, %v1221_v51  ;;  %v1343_v57 = vmul.f32 %v2783_v55, %v2765_v23  ;;  %v2785_v58 = vpop.eup %2784  ;;  %v2718_v55 = vld [vmem:[%s3663_s9 + $0x4] ss:$8 sps:$4 sm:$0xff]  }
 0x5ec   : > { %v2787_v62 = vpop.eup %2786  ;;  %v1464_v0 = vmul.f32 %v2785_v58, %v2771_v30 }
 0x5ed   : > { %2519 = vmatmul.mubr.msk.bf16.vlgmr.msra.gmra.mrb[16].mxu1 %vm1080_vm2, %v1223_v59  ;;  %v1345_v61 = vpack.c.bf16 %v1344_v56, %v1343_v57  ;;  %v1465_v1 = vmul.f32 %v2787_v62, %v2769_v29  ;;  %v2721_v56 = vld [vmem:[%s3663_s9 + $0x14] ss:$8 sps:$4 sm:$0xff]   ;;  %v2719_v57 = vld [vmem:[%s3663_s9 + $0x10] ss:$8 sps:$4 sm:$0xff]  }
 0x5ee   : > { %2529 = vmatpush3.bf16.msra.mxu1 %v1347_v54  ;;  %2530 = vmatprep.mubr.msk.bf16.mxu1 %vm2967_vm0, %v2966_v5  ;;  %v2716_v54 = vld [vmem:[%s3663_s9] ss:$8 sps:$4 sm:$0xff]  }
 0x5ef   : > { %2540 = vmatprep.subr.bf16.mxu1 %v2966_v5  ;;  %v1466_v2 = vpack.c.bf16 %v1465_v1, %v1464_v0 }
 0x5f5   : > { %2531 = vmatmul.mubr.msk.bf16.vlgmr.msra.gmra.mrb[20].mxu1 %vm1080_vm2, %v1345_v61 }
 0x5f6   : > { %2541 = vmatpush3.bf16.msra.mxu1 %v1468_v63  ;;  %2542 = vmatprep.mubr.msk.bf16.mxu1 %vm2967_vm0, %v2966_v5 }
 0x5f7   : > { %1811 = vmatprep.subr.bf16.mxu1 %v2718_v55 }
 0x5fd   : > { %2543 = vmatmul.mubr.msk.bf16.vlgmr.msra.gmra.mrb[24].mxu1 %vm1080_vm2, %v1466_v2  ;;  %v2724_v2 = vld [vmem:[%s3663_s9 + $0x24] ss:$8 sps:$4 sm:$0xff]  }
 0x5fe   : > { %1843 = vmatprep.mubr.bf16.mxu1 %v2965_v4  ;;  %1812 = vmatpush1.bf16.msra.mxu1 %v2716_v54 }
 0x5ff   : > { %1813 = vmatprep.subr.bf16.mxu1 %v2721_v56 }
 0x602   : > { %1814 = vmatpush1.bf16.msra.mxu1 %v2719_v57 }
 0x603   : > { %1815 = vmatprep.subr.bf16.mxu1 %v2724_v2 }
 0x606   : > { %1816 = vmatpush1.bf16.msra.mxu1 %v2722_v3 }
 0x607   : > { %1817 = vmatprep.subr.bf16.mxu1 %v2727_v6 }
 0x60a   : > { %1818 = vmatpush1.bf16.msra.mxu1 %v2725_v7 }
 0x60b   : > { %1819 = vmatprep.subr.bf16.mxu1 %v2730_v8 }
 0x60e   : > { %1820 = vmatpush1.bf16.msra.mxu1 %v2728_v9 }
 0x6c0   : > { %v1265_v4 = vpop.f32.mrb[16].mxu1 }
 0x6c1   : > { %v2520_v10 = vpop.f32.mrb[17].mxu1 }
 0x6c2   : > { %v1268_v12 = vpop.f32.mrb[18].mxu1  ;;  %v2731_v10 = vld [vmem:[%s3663_s9 + $0x50] ss:$8 sps:$4 sm:$0xff]  }
 0x6c3   : > { %v2661_v13 = vpack.i.bf16 %v1268_v12, %v1265_v4  ;;  %v2521_v14 = vpop.f32.mrb[19].mxu1  ;;  %v2733_v4 = vld [vmem:[%s3663_s9 + $0x54] ss:$8 sps:$4 sm:$0xff]   ;;  %v2734_v12 = vld [vmem:[%s3663_s9 + $0x60] ss:$8 sps:$4 sm:$0xff]  }
 0x6c4   : > { %1821 = vmatprep.subr.bf16.mxu1 %v2733_v4  ;;  %v2737_v14 = vld [vmem:[%s3663_s9 + $0x70] ss:$8 sps:$4 sm:$0xff]  }
 0x6c5   : > { %2662 = vrot.lane.b32.xlu1 %v2661_v13, %s2969_s17  ;;  %1822 = vmatpush1.bf16.msra.mxu1 %v2731_v10  ;;  %v2739_v13 = vld [vmem:[%s3663_s9 + $0x74] ss:$8 sps:$4 sm:$0xff]  }
 0x6c6   : > { %1823 = vmatprep.subr.bf16.mxu1 %v2736_v11 }
 0x6c8   : > { %v1386_v16 = vpop.f32.mrb[20].mxu1 }
 0x6c9   : > { %v2532_v17 = vpop.f32.mrb[21].mxu1  ;;  %1824 = vmatpush1.bf16.msra.mxu1 %v2734_v12 }
 0x6ca   : > { %v1389_v18 = vpop.f32.mrb[22].mxu1  ;;  %1825 = vmatprep.subr.bf16.mxu1 %v2739_v13  ;;  %v2742_v17 = vld [vmem:[%s3323_s4 + $0x48] sm:$0xff]  }
 0x6cb   : > { %v2666_v19 = vpack.i.bf16 %v1389_v18, %v1386_v16  ;;  %v2533_v20 = vpop.f32.mrb[23].mxu1  ;;  %v2741_v16 = vld [vmem:[%s3323_s4] sm:$0xff]   ;;  %v2744_v18 = vld [vmem:[%s3323_s4 + $0x50] sm:$0xff]  }
 0x6cc   : > { %v2746_v20 = vld [vmem:[%s3323_s4 + $0x58] sm:$0xff]  }
 0x6cd   : > { %2667 = vrot.lane.b32.xlu0 %v2666_v19, %s2970_s20  ;;  %1826 = vmatpush1.bf16.msra.mxu1 %v2737_v14  ;;  %v2745_v19 = vld [vmem:[%s3323_s4 + $0x10] sm:$0xff]  }
 0x6d0   : > { %v1507_v21 = vpop.f32.mrb[24].mxu1 }
 0x6d1   : > { %v2544_v22 = vpop.f32.mrb[25].mxu1 }
 0x6d2   : > { %v1510_v23 = vpop.f32.mrb[26].mxu1  ;;  %v2748_v22 = vld [vmem:[%s3323_s4 + $0x60] sm:$0xff]  }
 0x6d3   : > { %v2671_v24 = vpack.i.bf16 %v1510_v23, %v1507_v21  ;;  %v2545_v27 = vpop.f32.mrb[27].mxu1  ;;  %v2747_v21 = vld [vmem:[%s3323_s4 + $0x18] sm:$0xff]   ;;  %v2749_v23 = vld [vmem:[%s3323_s4 + $0x20] sm:$0xff]  }
 0x6d5   : > { %2672 = vrot.lane.b32.xlu1 %v2671_v24, %s2968_s18  ;;  %v2750_v24 = vld [vmem:[%s3323_s4 + $0x68] sm:$0xff]  }
 0x737   : > { %v2663_v28 = vpop.permute.xlu1 %2662 }
 0x738   : > { %v2665_v30 = vunpack.i.h.bf16 %v2663_v28  ;;  %v2664_v31 = vunpack.i.l.bf16 %v2663_v28 }
 0x73a   : > { %v1539_v37 = vsel %vm1032_vm1, %v3431_v41, %v2665_v30  ;;  %v1538_v39 = vsel %vm1032_vm1, %v3429_v38, %v2664_v31 }
 0x73f   : > { %v2668_v29 = vpop.permute.xlu0 %2667 }
 0x740   : > { %v2670_v5 = vunpack.i.h.bf16 %v2668_v29  ;;  %v2669_v34 = vunpack.i.l.bf16 %v2668_v29 }
 0x742   : > { %v1542_v43 = vsel %vm1540_vm3, %v1539_v37, %v2670_v5  ;;  %v1541_v44 = vsel %vm1540_vm3, %v1538_v39, %v2669_v34  ;;  %v2378_v37 = vld [vmem:[%s3667_s14] ss:$0 sm:$0xff] }
 0x747   : > { %v2673_v36 = vpop.permute.xlu1 %2672 }
 0x748   : > { %v2675_v40 = vunpack.i.h.bf16 %v2673_v36  ;;  %v2674_v42 = vunpack.i.l.bf16 %v2673_v36 }
 0x74a   : > { %v1545_v45 = vsel %vm1543_vm4, %v1542_v43, %v2675_v40  ;;  %v1544_v46 = vsel %vm1543_vm4, %v1541_v44, %v2674_v42  ;;  %v2379_v43 = vld [vmem:[%s3669_s0] ss:$0 sm:$0xff] }
 0x74b   : > { %v1546_v47 = vpack.c.bf16 %v1545_v45, %v1544_v46 }
 0x74d   : > { %2563 = vmatmul.mubr.bf16.vlgmr.msra.gmra.mrb[12].mxu0 %v1546_v47 }
 0x74e   : > { %2457 = vmatpush3.bf16.msra.mxu0 %v2741_v16 }
 0x74f   : > { %2458 = vmatprep.subr.bf16.mxu0 %v2742_v17 }
 0x752   : > { %2459 = vmatpush3.bf16.msra.mxu0 %v2743_v60 }
 0x753   : > { %2460 = vmatprep.subr.bf16.mxu0 %v2744_v18 }
 0x756   : > { %2461 = vmatpush3.bf16.msra.mxu0 %v2745_v19 }
 0x757   : > { %2462 = vmatprep.subr.bf16.mxu0 %v2746_v20 }
 0x75a   : > { %2463 = vmatpush3.bf16.msra.mxu0 %v2747_v21 }
 0x75b   : > { %2464 = vmatprep.subr.bf16.mxu0 %v2748_v22 }
 0x75e   : > { %2465 = vmatpush3.bf16.msra.mxu0 %v2749_v23 }
 0x75f   : > { %2466 = vmatprep.subr.bf16.mxu0 %v2750_v24 }
 0x820   : > { %v1652_v41 = vpop.f32.mrb[12].mxu0 }
 0x821   : > { %v1653_v49 = vadd.f32 %v2369_v48, %v1652_v41  ;;  %v2564_v38 = vpop.f32.mrb[13].mxu0  ;;  %v2752_v41 = vld [vmem:[%s3323_s4 + $0x70] sm:$0xff]  }
 0x822   : > { %v1655_v50 = vpop.f32.mrb[14].mxu0  ;;  %v2754_v38 = vld [vmem:[%s3323_s4 + $0x78] sm:$0xff]  }
 0x823   : > { %v1656_v51 = vadd.f32 %v2369_v48, %v1655_v50  ;;  %v2565_v52 = vpop.f32.mrb[15].mxu0  ;;  %v1659_v59 = vadd.f32 %v1653_v49, %v3352_v25  ;;  %v2751_v48 = vld [vmem:[%s3323_s4 + $0x28] sm:$0xff]   ;;  %v2753_v49 = vld [vmem:[%s3323_s4 + $0x30] sm:$0xff]   ;;  %v2755_v50 = vld [vmem:[%s3323_s4 + $0x38] sm:$0xff]  }
 0x824   : > { %2467 = vmatpush3.bf16.msra.mxu0 %v2751_v48 }
 0x825   : > { %1663 = vadd.xlane.f32.xlu0 %v1659_v59  ;;  %v1660_v53 = vadd.f32 %v1656_v51, %v3354_v26  ;;  %2468 = vmatprep.subr.bf16.mxu0 %v2752_v41  ;;  %v1719_v51 = vld [vmem:[%s3303_s25] sm:$0x3] }
 0x826   : > { %v1724_v52 = vrot.slane %v1719_v51, %v795_v33 }
 0x827   : > { %1665 = vadd.xlane.f32.xlu1 %v1660_v53 }
 0x828   : > { %2469 = vmatpush3.bf16.msra.mxu0 %v2753_v49 }
 0x829   : > { %2470 = vmatprep.subr.bf16.mxu0 %v2754_v38 }
 0x82c   : > { %2471 = vmatpush3.bf16.msra.mxu0 %v2755_v50 }
 0x8b2   : > { %v1664_v58 = vpop.xlane.xlu0 %1663 }
 0x8b3   : > { %v1668_v61 = vmul.f32 0.0078125, %v1664_v58 }
 0x8b4   : > { %v1666_v62 = vpop.xlane.xlu1 %1665 }
 0x8b5   : > { %v1670_v25 = vsub.f32 %v1659_v59, %v1668_v61  ;;  %v1669_v26 = vmul.f32 0.0078125, %v1666_v62  ;;  %v1728_v59 = vrot.slane %v1719_v51, %v799_v35 }
 0x8b7   : > { %v3500_v63 = vsub.f32 %v1660_v53, %v1669_v26  ;;  %v1672_v0 = vmul.f32 %v1670_v25, %v1670_v25 }
 0x8b9   : > { %1674 = vadd.xlane.f32.xlu0 %v1672_v0  ;;  %v1673_v1 = vmul.f32 %v3500_v63, %v3500_v63 }
 0x8bd   : > { %1676 = vadd.xlane.f32.xlu0 %v1673_v1 }
 0x946   : > { %v1675_v27 = vpop.xlane.xlu0 %1674 }
 0x947   : > { %v1678_v28 = vmul.f32 0.0078125, %v1675_v27 }
 0x949   : > { %v1680_v29 = vadd.f32 1e-05, %v1678_v28  ;;  %v2413_v28 = vld [vmem:[%s739_s27] ss:$0 sm:$0xff] }
 0x94a   : > { %v1677_v30 = vpop.xlane.xlu0 %1676 }
 0x94b   : > { %2788 = vrsqrt.f32 %v1680_v29  ;;  %v1679_v31 = vmul.f32 0.0078125, %v1677_v30 }
 0x94d   : > { %v1681_v5 = vadd.f32 1e-05, %v1679_v31  ;;  %v2414_v31 = vld [vmem:[%s742_s5] ss:$0 sm:$0xff] }
 0x94f   : > { %2790 = vrsqrt.f32 %v1681_v5 }
 0x955   : > { %v2789_v34 = vpop.eup %2788 }
 0x956   : > { %v1684_v36 = vmul.f32 %v2789_v34, %v1670_v25 }
 0x958   : > { %v1692_v42 = vmul.f32 %v2378_v37, %v1684_v36 }
 0x959   : > { %v2791_v39 = vpop.eup %2790 }
 0x95a   : > { %v1685_v40 = vmul.f32 %v2791_v39, %v3500_v63  ;;  %v1700_v45 = vadd.f32 %v2379_v43, %v1692_v42 }
 0x95c   : > { %v1693_v44 = vmul.f32 %v2378_v37, %v1685_v40 }
 0x95e   : > { %v1701_v46 = vadd.f32 %v2379_v43, %v1693_v44 }
 0x960   : > { %v1702_v47 = vpack.c.bf16 %v1701_v46, %v1700_v45 }
 0x962   : > { %1844 = vmatmul.mubr.bf16.vlgmr.msra.gmra.mrb[28].mxu1 %v1702_v47 }
 0xa35   : > { %v1845_v53 = vpop.f32.mrb[28].mxu1 }
 0xa36   : > { %v1846_v54 = vadd.f32 %v1845_v53, %v1724_v52  ;;  %v1847_v55 = vpop.f32.mrb[29].mxu1 }
 0xa37   : > { %v1848_v56 = vadd.f32 %v1847_v55, %v1728_v59  ;;  %v1849_v57 = vpop.f32.mrb[30].mxu1 }
 0xa38   : > { %v1850_v58 = vadd.f32 %v1849_v57, %v1724_v52  ;;  %v1851_v61 = vpop.f32.mrb[31].mxu1  ;;  %v1854_v25 = vmax.f32 %v1846_v54, 0.0 }
 0xa39   : > { %v1852_v62 = vadd.f32 %v1851_v61, %v1728_v59  ;;  %v1855_v63 = vmax.f32 %v1848_v56, 0.0 }
 0xa3a   : > { %v1856_v26 = vmax.f32 %v1850_v58, 0.0 }
 0xa3b   : > { %v1857_v0 = vmax.f32 %v1852_v62, 0.0 }
 0xa3c   : > { %v1858_v1 = vpack.c.bf16 %v1856_v26, %v1854_v25 }
 0xa3d   : > { %v1859_v2 = vpack.c.bf16 %v1857_v0, %v1855_v63 }
 0xa3f   : > { %2027 = vmatprep.mubr.bf16.mxu0 %v1859_v2 }
 0xa40   : > { %2028 = vmatmul.mubr.bf16.vlgmr.msra.gmra.mrb[16].mxu0 %v1858_v1 }
 0xb13   : > { %v2472_v33 = vpop.f32.mrb[16].mxu0 }
 0xb14   : > { %v2473_v35 = vpop.f32.mrb[17].mxu0 }
 0xb15   : > { %v2474_v3 = vadd.f32 %v2473_v35, %v2472_v33  ;;  %v2475_v6 = vpop.f32.mrb[18].mxu0 }
 0xb16   : > { %v2476_v7 = vpop.f32.mrb[19].mxu0 }
 0xb17   : > { %v2030_v8 = vadd.f32 %v2474_v3, %v2396_v32  ;;  %v2477_v9 = vadd.f32 %v2476_v7, %v2475_v6 }
 0xb19   : > { %v2033_v4 = vadd.f32 %v2477_v9, %v2396_v32  ;;  %v2036_v10 = vadd.f32 %v2030_v8, %v1700_v45 }
 0xb1b   : > { %2040 = vadd.xlane.f32.xlu0 %v2036_v10  ;;  %v2037_v11 = vadd.f32 %v2033_v4, %v1701_v46 }
 0xb1d   : > { %2042 = vadd.xlane.f32.xlu1 %v2037_v11 }
 0xba8   : > { %v2041_v12 = vpop.xlane.xlu0 %2040 }
 0xba9   : > { %v2044_v13 = vmul.f32 0.0078125, %v2041_v12 }
 0xbaa   : > { %v2043_v14 = vpop.xlane.xlu1 %2042 }
 0xbab   : > { %v2046_v15 = vsub.f32 %v2036_v10, %v2044_v13  ;;  %v2045_v16 = vmul.f32 0.0078125, %v2043_v14 }
 0xbad   : > { %v2047_v17 = vsub.f32 %v2037_v11, %v2045_v16  ;;  %v2048_v60 = vmul.f32 %v2046_v15, %v2046_v15 }
 0xbaf   : > { %2050 = vadd.xlane.f32.xlu0 %v2048_v60  ;;  %v2049_v18 = vmul.f32 %v2047_v17, %v2047_v17 }
 0xbb1   : > { %2052 = vadd.xlane.f32.xlu1 %v2049_v18 }
 0xc3c   : > { %v2051_v19 = vpop.xlane.xlu0 %2050 }
 0xc3d   : > { %v2054_v20 = vmul.f32 0.0078125, %v2051_v19 }
 0xc3e   : > { %v2053_v21 = vpop.xlane.xlu1 %2052 }
 0xc3f   : > { %v2056_v22 = vadd.f32 1e-05, %v2054_v20  ;;  %v2055_v23 = vmul.f32 0.0078125, %v2053_v21 }
 0xc41   : > { %2792 = vrsqrt.f32 %v2056_v22  ;;  %v2057_v24 = vadd.f32 1e-05, %v2055_v23 }
 0xc43   : > { %2794 = vrsqrt.f32 %v2057_v24 }
 0xc4b   : > { %v2793_v27 = vpop.eup %2792 }
 0xc4c   : > { %v2060_v29 = vmul.f32 %v2793_v27, %v2046_v15 }
 0xc4d   : > { %v2795_v30 = vpop.eup %2794 }
 0xc4e   : > { %v2068_v5 = vmul.f32 %v2413_v28, %v2060_v29  ;;  %v2061_v34 = vmul.f32 %v2795_v30, %v2047_v17  ;;  %2083 = sbr.rel (%p2415_p11) target bundleno = 3157 (0xc55), region = 96 }
 0xc50   : > { %v2076_v36 = vadd.f32 %v2414_v31, %v2068_v5  ;;  %v2069_v37 = vmul.f32 %v2413_v28, %v2061_v34 }
 0xc52   : > { %2078 = vst [vmem:[#allocation2] sm:$0xff] %v2076_v36  ;;  %v2077_v39 = vadd.f32 %v2414_v31, %v2069_v37  ;;  %2084 = vst [vmem:[%s3321_s12] sm:$0xff] (!%p2415_p11), %v2076_v36 }
 0xc54   : > { %2079 = vst [vmem:[#allocation2 + $0x8] sm:$0xff] %v2077_v39 }
 0xc55 PF: > { %s3673_s27 = sld [smem:[#allocation14_spill]]  ;;  %s3674_s29 = sld [smem:[#allocation10_spill]] }
 0xc56   : > { %s3675_s30 = sld [smem:[#allocation11_spill]]  ;;  %s3676_s15 = sld [smem:[#allocation17_spill]] }
 0xc57   : > { %s3677_s16 = sld [smem:[#allocation12_spill]]  ;;  %s3678_s17 = sld [smem:[#allocation13_spill]] }
 0xc58   : > { %s3679_s18 = sld [smem:[#allocation15_spill]]  ;;  %s3680_s19 = sld [smem:[#allocation16_spill]] }
 0xc5b   : > { %s30_s20 = sadd.s32 1, %s3673_s27  }
 0xc5c   : > { %p27_p4 = scmp.ge.s32.totalorder %s30_s20, 6  }
 0xc5e   :  { %29 = sbr.rel (!%p27_p4) target bundleno = 22 (0x16), region = 181 }
 0xc65   :  { %2104 = vsyncpa [#allocation4], 1 }
 0xc66   :  { %2106 = vsyncpa [#allocation4 + $0x1], 1 }
 0xc67   :  { %2107 = vsyncpa [#allocation6], 1 }
 0xc68   :  { %2109 = vsyncpa [#allocation6 + $0x1], 1 }

</bundles_post_ra>
